<compile_context>
chip_gen: v7x
topology: tpu7x:2x2x1
jax: 0.10.0
libtpu: 0.0.40
codegen_flags: <defaults>
</compile_context>

<pallas_src>
import functools

import jax
import jax.numpy as jnp
from jax.experimental import pallas as pl
from jax.experimental.pallas import tpu as pltpu

CPAD = 128                      # lane-dense padded channel width
COMPUTE_DTYPE = jnp.bfloat16    # MXU operand dtype (accumulation stays f32)


def _vmem_specs(n):
    return [pl.BlockSpec(memory_space=pltpu.MemorySpace.VMEM)] * n


def _bytes(*arrs):
    return int(sum(a.size * a.dtype.itemsize for a in arrs))


# ----------------------------------------------------------------------------
# Kernels A/B: y = relu?(x @ w + b)   (bf16 operands, f32 accumulate/epilogue)
# ----------------------------------------------------------------------------
def _gemm_bias_act_kernel(x_ref, w_ref, b_ref, o_ref, *, apply_relu):
    acc = jnp.dot(x_ref[...], w_ref[...], preferred_element_type=jnp.float32)
    acc = acc + b_ref[...]                 # b is (1, N) -> broadcasts over rows
    if apply_relu:
        acc = jnp.maximum(acc, 0.0)
    o_ref[...] = acc.astype(o_ref.dtype)


def pallas_linear(x, w, b, *, apply_relu, out_dtype):
    M, K = x.shape
    K2, N = w.shape
    assert K == K2, (K, K2)
    kernel = functools.partial(_gemm_bias_act_kernel, apply_relu=apply_relu)
    cost = pl.CostEstimate(
        flops=2 * M * K * N, transcendentals=0,
        bytes_accessed=_bytes(x, w, b) + M * N * jnp.dtype(out_dtype).itemsize)
    # NOTE: all operands here are tiny (<1 MiB), so a single whole-array VMEM
    # block is used (no grid).  For realistic batches (84x84 Atari, batch
    # 128+) add grid=(pl.cdiv(M, TM),) with BlockSpec((TM, K), lambda i:(i,0)),
    # TM~1024 on v5e/v6e and TM~512 on v7x (64 MiB VMEM), dimension_semantics
    # ("parallel",).
    return pl.pallas_call(
        kernel,
        out_shape=jax.ShapeDtypeStruct((M, N), out_dtype),
        in_specs=_vmem_specs(3),
        out_specs=pl.BlockSpec(memory_space=pltpu.MemorySpace.VMEM),
        cost_estimate=cost,
    )(x, w, b)


# ----------------------------------------------------------------------------
# Kernel C: conv3 (as per-spatial-position GEMMs) + flatten + fc1 + V/A heads.
# The PyTorch flatten permutation is pre-folded into fc1w_ref's blocks, so the
# per-position partial products are simply summed -- no in-kernel relayout.
# ----------------------------------------------------------------------------
def _tail_kernel(p3_ref, w3_ref, b3_ref, fc1w_ref, fc1b_ref, hw_ref, hb_ref,
                 o_ref):
    P3, N, _ = p3_ref.shape
    H = fc1w_ref.shape[2]
    acc = jnp.zeros((N, H), jnp.float32)
    for p in range(P3):  # static unroll over conv3 output spatial positions
        h3 = jnp.dot(p3_ref[p], w3_ref[...], preferred_element_type=jnp.float32)
        h3 = jnp.maximum(h3 + b3_ref[...], 0.0).astype(COMPUTE_DTYPE)
        acc = acc + jnp.dot(h3, fc1w_ref[p], preferred_element_type=jnp.float32)
    fc1 = jnp.maximum(acc + fc1b_ref[...], 0.0).astype(COMPUTE_DTYPE)
    out = jnp.dot(fc1, hw_ref[...], preferred_element_type=jnp.float32)
    o_ref[...] = (out + hb_ref[...]).astype(o_ref.dtype)


def pallas_conv3_fc1_heads(p3, w3, b3, fc1w, fc1b, hw, hb):
    P3, N, K3 = p3.shape
    H = fc1w.shape[2]
    flops = 2 * N * (P3 * K3 * CPAD + P3 * CPAD * H + H * CPAD)
    cost = pl.CostEstimate(
        flops=flops, transcendentals=0,
        bytes_accessed=_bytes(p3, w3, b3, fc1w, fc1b, hw, hb) + N * CPAD * 4)
    return pl.pallas_call(
        _tail_kernel,
        out_shape=jax.ShapeDtypeStruct((N, CPAD), jnp.float32),
        in_specs=_vmem_specs(7),
        out_specs=pl.BlockSpec(memory_space=pltpu.MemorySpace.VMEM),
        cost_estimate=cost,
    )(p3, w3, b3, fc1w, fc1b, hw, hb)


# ----------------------------------------------------------------------------
# XLA glue: NHWC im2col (pure layout).  Column order: (ki*KW + kj)*C + c,
# matching the row order of the prepared weight matrices.
# ----------------------------------------------------------------------------
def _im2col_nhwc(x, kh, kw, stride):
    N, Hh, Ww, C = x.shape
    OH = (Hh - kh) // stride + 1
    OW = (Ww - kw) // stride + 1
    cols = []
    for i in range(kh):
        for j in range(kw):
            cols.append(x[:, i:i + stride * OH:stride, j:j + stride * OW:stride, :])
    p = jnp.stack(cols, axis=3)                       # (N, OH, OW, kh*kw, C)
    return p.reshape(N * OH * OW, kh * kw * C), (N, OH, OW)


# ----------------------------------------------------------------------------
# Forward pass
# ----------------------------------------------------------------------------
def dueling_dqn_forward(kp, n_actions, state):
    # state: (N, C, H, W), PyTorch NCHW convention only at the boundary.
    x = jnp.transpose(state, (0, 2, 3, 1)).astype(COMPUTE_DTYPE)     # NHWC once
    # --- conv1 (8x8 / stride 4) ---
    p1, (N, OH1, OW1) = _im2col_nhwc(x, 8, 8, 4)
    y1 = pallas_linear(p1, kp["w1"], kp["b1"], apply_relu=True,
                       out_dtype=COMPUTE_DTYPE)                       # (N*OH1*OW1, 128)
    # --- conv2 (4x4 / stride 2) ---
    p2, (_, OH2, OW2) = _im2col_nhwc(y1.reshape(N, OH1, OW1, CPAD), 4, 4, 2)
    y2 = pallas_linear(p2, kp["w2"], kp["b2"], apply_relu=True,
                       out_dtype=COMPUTE_DTYPE)                       # (N*OH2*OW2, 128)
    # --- conv3 (3x3 / stride 1) + flatten + fc1 + fused V/A heads ---
    y2 = y2.reshape(N, OH2, OW2, CPAD)
    OH3, OW3 = OH2 - 2, OW2 - 2
    cols = []
    for i in range(3):
        for j in range(3):
            cols.append(y2[:, i:i + OH3, j:j + OW3, :])
    p3 = jnp.stack(cols, axis=3).reshape(N, OH3 * OW3, 9 * CPAD)
    p3 = jnp.transpose(p3, (1, 0, 2))                                 # (P3, N, K3)
    out = pallas_conv3_fc1_heads(p3, kp["w3"], kp["b3"],
                                 kp["fc1w"], kp["fc1b"], kp["hw"], kp["hb"])
    V = out[:, 0:1]
    A = out[:, 1:1 + n_actions]
    return V, A


# ----------------------------------------------------------------------------
# Parameter preparation (done ONCE): pad channels to 128 lanes, fold the
# PyTorch NCHW flatten into fc1 blocks, fuse V/A weights, pre-cast to bf16.
# ----------------------------------------------------------------------------
def _conv_out(h, k, s):
    return (h - k) // s + 1


def _conv_w_to_mat(w, cin_pad, cout_pad):
    # w: (Cout, Cin, KH, KW) PyTorch layout -> (KH*KW*cin_pad, cout_pad)
    Cout, Cin, KH, KW = w.shape
    wm = jnp.transpose(w, (2, 3, 1, 0)).reshape(KH * KW, Cin, Cout)
    wm = jnp.pad(wm, ((0, 0), (0, cin_pad - Cin), (0, cout_pad - Cout)))
    return wm.reshape(KH * KW * cin_pad, cout_pad)


def _pad_bias(b, n_pad):
    return jnp.pad(b, (0, n_pad - b.shape[0])).reshape(1, n_pad).astype(jnp.float32)


def prepare_kernel_params(params, n_actions, input_size):
    assert 1 + n_actions <= CPAD
    C, H, W = input_size
    h1, w1 = _conv_out(H, 8, 4), _conv_out(W, 8, 4)
    h2, w2 = _conv_out(h1, 4, 2), _conv_out(w1, 4, 2)
    h3, w3 = _conv_out(h2, 3, 1), _conv_out(w2, 3, 1)
    P3 = h3 * w3

    kp = {
        "w1": _conv_w_to_mat(params["cv1_w"], C, CPAD).astype(COMPUTE_DTYPE),
        "b1": _pad_bias(params["cv1_b"], CPAD),
        "w2": _conv_w_to_mat(params["cv2_w"], CPAD, CPAD).astype(COMPUTE_DTYPE),
        "b2": _pad_bias(params["cv2_b"], CPAD),
        "w3": _conv_w_to_mat(params["cv3_w"], CPAD, CPAD).astype(COMPUTE_DTYPE),
        "b3": _pad_bias(params["cv3_b"], CPAD),
    }
    # fc1_w is stored (in, out) with PyTorch flatten row order c*P3 + p.
    fc1w = params["fc1_w"].reshape(64, P3, 512)
    fc1w = jnp.transpose(fc1w, (1, 0, 2))                      # (P3, 64, 512)
    fc1w = jnp.pad(fc1w, ((0, 0), (0, CPAD - 64), (0, 0)))     # (P3, 128, 512)
    kp["fc1w"] = fc1w.astype(COMPUTE_DTYPE)
    kp["fc1b"] = params["fc1_b"].reshape(1, 512).astype(jnp.float32)
    # Fused head: column 0 = V, columns 1..n_actions = A, rest zero-padded.
    hw = jnp.zeros((512, CPAD), jnp.float32)
    hw = hw.at[:, 0:1].set(params["V_w"])
    hw = hw.at[:, 1:1 + n_actions].set(params["A_w"])
    kp["hw"] = hw.astype(COMPUTE_DTYPE)
    hb = jnp.zeros((1, CPAD), jnp.float32)
    hb = hb.at[0, 0].set(params["V_b"][0])
    hb = hb.at[0, 1:1 + n_actions].set(params["A_b"])
    kp["hb"] = hb
    return kp


# ----------------------------------------------------------------------------
# Deterministic synthetic parameter init (shapes match nn.Module.__init__)
# ----------------------------------------------------------------------------
def init_params(key, n_actions, input_size):
    C, H, W = input_size
    h1, w1 = _conv_out(H, 8, 4), _conv_out(W, 8, 4)
    h2, w2 = _conv_out(h1, 4, 2), _conv_out(w1, 4, 2)
    h3, w3 = _conv_out(h2, 3, 1), _conv_out(w2, 3, 1)
    fc1_in = 64 * h3 * w3

    keys = jax.random.split(key, 12)

    def init(k, shape, fan_in):
        return jax.random.normal(k, shape, jnp.float32) * (1.0 / jnp.sqrt(float(fan_in)))

    return {
        "cv1_w": init(keys[0], (32, C, 8, 8), C * 8 * 8),
        "cv1_b": init(keys[1], (32,), C * 8 * 8),
        "cv2_w": init(keys[2], (64, 32, 4, 4), 32 * 4 * 4),
        "cv2_b": init(keys[3], (64,), 32 * 4 * 4),
        "cv3_w": init(keys[4], (64, 64, 3, 3), 64 * 3 * 3),
        "cv3_b": init(keys[5], (64,), 64 * 3 * 3),
        # Linear weights stored as (in, out) so the kernel computes x @ W + b
        "fc1_w": init(keys[6], (fc1_in, 512), fc1_in),
        "fc1_b": init(keys[7], (512,), fc1_in),
        "V_w": init(keys[8], (512, 1), 512),
        "V_b": init(keys[9], (1,), 512),
        "A_w": init(keys[10], (512, n_actions), 512),
        "A_b": init(keys[11], (n_actions,), 512),
    }


if __name__ == "__main__":
    key = jax.random.PRNGKey(0)
    n_actions = 6
    input_size = (4, 36, 36)   # small Atari-like frame stack; conv chain -> 1x1x64
    batch = 2

    pkey, xkey = jax.random.split(key)
    params = init_params(pkey, n_actions, input_size)
    kparams = prepare_kernel_params(params, n_actions, input_size)
    state = jax.random.normal(xkey, (batch,) + input_size, jnp.float32)  # NCHW

    fwd = jax.jit(functools.partial(dueling_dqn_forward, kparams, n_actions))
    V, A = fwd(state)
    jax.block_until_ready((V, A))

    assert V.shape == (batch, 1), V.shape
    assert A.shape == (batch, n_actions), A.shape
    assert V.dtype == jnp.float32 and A.dtype == jnp.float32

    print("KERNEL_OK")
</pallas_src>

<mosaic_0001>
module attributes {stable_mosaic.version = 11 : i64} {
  func.func @_gemm_bias_act_kernel(%arg0: memref<128x256xbf16, #tpu.memory_space<vmem>>, %arg1: memref<256x128xbf16, #tpu.memory_space<vmem>>, %arg2: memref<1x128xf32, #tpu.memory_space<vmem>>, %arg3: memref<128x128xbf16, #tpu.memory_space<vmem>>) attributes {dimension_semantics = [], scalar_prefetch = 0 : i64, scratch_operands = 0 : i64, tpu.core_type = #tpu.core_type<tc>} {
    %c0 = arith.constant 0 : index
    %c0_0 = arith.constant 0 : index
    %0 = vector.load %arg0[%c0, %c0_0] : memref<128x256xbf16, #tpu.memory_space<vmem>>, vector<128x256xbf16>
    %c0_1 = arith.constant 0 : index
    %c0_2 = arith.constant 0 : index
    %1 = vector.load %arg1[%c0_1, %c0_2] : memref<256x128xbf16, #tpu.memory_space<vmem>>, vector<256x128xbf16>
    %cst = arith.constant dense<0.000000e+00> : vector<128x128xf32>
    %2 = tpu.matmul %0, %1, %cst {dimension_numbers = #tpu.dot_dimension_numbers<[1], [0], [0], [1], [0, 0, 1, 1], [], []>} : vector<128x256xbf16>, vector<256x128xbf16>, vector<128x128xf32> -> vector<128x128xf32>
    %c0_3 = arith.constant 0 : index
    %c0_4 = arith.constant 0 : index
    %3 = vector.load %arg2[%c0_3, %c0_4] : memref<1x128xf32, #tpu.memory_space<vmem>>, vector<1x128xf32>
    %4 = vector.broadcast %3 : vector<1x128xf32> to vector<128x128xf32>
    %5 = arith.addf %2, %4 : vector<128x128xf32>
    %cst_5 = arith.constant 0.000000e+00 : f32
    %6 = vector.broadcast %cst_5 : f32 to vector<128x128xf32>
    %7 = arith.maximumf %5, %6 : vector<128x128xf32>
    %8 = arith.truncf %7 : vector<128x128xf32> to vector<128x128xbf16>
    %c0_6 = arith.constant 0 : index
    %c0_7 = arith.constant 0 : index
    %9 = vector.load %arg3[%c0_6, %c0_7] : memref<128x128xbf16, #tpu.memory_space<vmem>>, vector<128x128xbf16>
    tpu.vector_store %arg3[%c0_6, %c0_7], %8 {strides = array<i32>} : memref<128x128xbf16, #tpu.memory_space<vmem>>, vector<128x128xbf16>,
    return
  }
}

module attributes {stable_mosaic.version = 11 : i64} {
  func.func @_gemm_bias_act_kernel(%arg0: memref<18x2048xbf16, #tpu.memory_space<vmem>>, %arg1: memref<2048x128xbf16, #tpu.memory_space<vmem>>, %arg2: memref<1x128xf32, #tpu.memory_space<vmem>>, %arg3: memref<18x128xbf16, #tpu.memory_space<vmem>>) attributes {dimension_semantics = [], scalar_prefetch = 0 : i64, scratch_operands = 0 : i64, tpu.core_type = #tpu.core_type<tc>} {
    %c0 = arith.constant 0 : index
    %c0_0 = arith.constant 0 : index
    %0 = vector.load %arg0[%c0, %c0_0] : memref<18x2048xbf16, #tpu.memory_space<vmem>>, vector<18x2048xbf16>
    %c0_1 = arith.constant 0 : index
    %c0_2 = arith.constant 0 : index
    %1 = vector.load %arg1[%c0_1, %c0_2] : memref<2048x128xbf16, #tpu.memory_space<vmem>>, vector<2048x128xbf16>
    %cst = arith.constant dense<0.000000e+00> : vector<18x128xf32>
    %2 = tpu.matmul %0, %1, %cst {dimension_numbers = #tpu.dot_dimension_numbers<[1], [0], [0], [1], [0, 0, 1, 1], [], []>} : vector<18x2048xbf16>, vector<2048x128xbf16>, vector<18x128xf32> -> vector<18x128xf32>
    %c0_3 = arith.constant 0 : index
    %c0_4 = arith.constant 0 : index
    %3 = vector.load %arg2[%c0_3, %c0_4] : memref<1x128xf32, #tpu.memory_space<vmem>>, vector<1x128xf32>
    %4 = vector.broadcast %3 : vector<1x128xf32> to vector<18x128xf32>
    %5 = arith.addf %2, %4 : vector<18x128xf32>
    %cst_5 = arith.constant 0.000000e+00 : f32
    %6 = vector.broadcast %cst_5 : f32 to vector<18x128xf32>
    %7 = arith.maximumf %5, %6 : vector<18x128xf32>
    %8 = arith.truncf %7 : vector<18x128xf32> to vector<18x128xbf16>
    %c0_6 = arith.constant 0 : index
    %c0_7 = arith.constant 0 : index
    %9 = vector.load %arg3[%c0_6, %c0_7] : memref<18x128xbf16, #tpu.memory_space<vmem>>, vector<18x128xbf16>
    tpu.vector_store %arg3[%c0_6, %c0_7], %8 {strides = array<i32>} : memref<18x128xbf16, #tpu.memory_space<vmem>>, vector<18x128xbf16>,
    return
  }
}

module attributes {stable_mosaic.version = 11 : i64} {
  func.func @_tail_kernel(%arg0: memref<1x2x1152xbf16, #tpu.memory_space<vmem>>, %arg1: memref<1152x128xbf16, #tpu.memory_space<vmem>>, %arg2: memref<1x128xf32, #tpu.memory_space<vmem>>, %arg3: memref<1x128x512xbf16, #tpu.memory_space<vmem>>, %arg4: memref<1x512xf32, #tpu.memory_space<vmem>>, %arg5: memref<512x128xbf16, #tpu.memory_space<vmem>>, %arg6: memref<1x128xf32, #tpu.memory_space<vmem>>, %arg7: memref<2x128xf32, #tpu.memory_space<vmem>>) attributes {dimension_semantics = [], scalar_prefetch = 0 : i64, scratch_operands = 0 : i64, tpu.core_type = #tpu.core_type<tc>} {
    %cst = arith.constant 0.000000e+00 : f32
    %0 = vector.broadcast %cst : f32 to vector<2x512xf32>
    %c0 = arith.constant 0 : index
    %c0_0 = arith.constant 0 : index
    %c0_1 = arith.constant 0 : index
    %1 = vector.load %arg0[%c0, %c0_0, %c0_1] : memref<1x2x1152xbf16, #tpu.memory_space<vmem>>, vector<1x2x1152xbf16>
    %2 = vector.shape_cast %1 : vector<1x2x1152xbf16> to vector<2x1152xbf16>
    %c0_2 = arith.constant 0 : index
    %c0_3 = arith.constant 0 : index
    %3 = vector.load %arg1[%c0_2, %c0_3] : memref<1152x128xbf16, #tpu.memory_space<vmem>>, vector<1152x128xbf16>
    %cst_4 = arith.constant dense<0.000000e+00> : vector<2x128xf32>
    %4 = tpu.matmul %2, %3, %cst_4 {dimension_numbers = #tpu.dot_dimension_numbers<[1], [0], [0], [1], [0, 0, 1, 1], [], []>} : vector<2x1152xbf16>, vector<1152x128xbf16>, vector<2x128xf32> -> vector<2x128xf32>
    %c0_5 = arith.constant 0 : index
    %c0_6 = arith.constant 0 : index
    %5 = vector.load %arg2[%c0_5, %c0_6] : memref<1x128xf32, #tpu.memory_space<vmem>>, vector<1x128xf32>
    %6 = vector.broadcast %5 : vector<1x128xf32> to vector<2x128xf32>
    %7 = arith.addf %4, %6 : vector<2x128xf32>
    %cst_7 = arith.constant 0.000000e+00 : f32
    %8 = vector.broadcast %cst_7 : f32 to vector<2x128xf32>
    %9 = arith.maximumf %7, %8 : vector<2x128xf32>
    %10 = arith.truncf %9 : vector<2x128xf32> to vector<2x128xbf16>
    %c0_8 = arith.constant 0 : index
    %c0_9 = arith.constant 0 : index
    %c0_10 = arith.constant 0 : index
    %11 = vector.load %arg3[%c0_8, %c0_9, %c0_10] : memref<1x128x512xbf16, #tpu.memory_space<vmem>>, vector<1x128x512xbf16>
    %12 = vector.shape_cast %11 : vector<1x128x512xbf16> to vector<128x512xbf16>
    %cst_11 = arith.constant dense<0.000000e+00> : vector<2x512xf32>
    %13 = tpu.matmul %10, %12, %cst_11 {dimension_numbers = #tpu.dot_dimension_numbers<[1], [0], [0], [1], [0, 0, 1, 1], [], []>} : vector<2x128xbf16>, vector<128x512xbf16>, vector<2x512xf32> -> vector<2x512xf32>
    %14 = arith.addf %0, %13 : vector<2x512xf32>
    %c0_12 = arith.constant 0 : index
    %c0_13 = arith.constant 0 : index
    %15 = vector.load %arg4[%c0_12, %c0_13] : memref<1x512xf32, #tpu.memory_space<vmem>>, vector<1x512xf32>
    %16 = vector.broadcast %15 : vector<1x512xf32> to vector<2x512xf32>
    %17 = arith.addf %14, %16 : vector<2x512xf32>
    %cst_14 = arith.constant 0.000000e+00 : f32
    %18 = vector.broadcast %cst_14 : f32 to vector<2x512xf32>
    %19 = arith.maximumf %17, %18 : vector<2x512xf32>
    %20 = arith.truncf %19 : vector<2x512xf32> to vector<2x512xbf16>
    %c0_15 = arith.constant 0 : index
    %c0_16 = arith.constant 0 : index
    %21 = vector.load %arg5[%c0_15, %c0_16] : memref<512x128xbf16, #tpu.memory_space<vmem>>, vector<512x128xbf16>
    %cst_17 = arith.constant dense<0.000000e+00> : vector<2x128xf32>
    %22 = tpu.matmul %20, %21, %cst_17 {dimension_numbers = #tpu.dot_dimension_numbers<[1], [0], [0], [1], [0, 0, 1, 1], [], []>} : vector<2x512xbf16>, vector<512x128xbf16>, vector<2x128xf32> -> vector<2x128xf32>
    %c0_18 = arith.constant 0 : index
    %c0_19 = arith.constant 0 : index
    %23 = vector.load %arg6[%c0_18, %c0_19] : memref<1x128xf32, #tpu.memory_space<vmem>>, vector<1x128xf32>
    %24 = vector.broadcast %23 : vector<1x128xf32> to vector<2x128xf32>
    %25 = arith.addf %22, %24 : vector<2x128xf32>
    %c0_20 = arith.constant 0 : index
    %c0_21 = arith.constant 0 : index
    %26 = vector.load %arg7[%c0_20, %c0_21] : memref<2x128xf32, #tpu.memory_space<vmem>>, vector<2x128xf32>
    tpu.vector_store %arg7[%c0_20, %c0_21], %25 {strides = array<i32>} : memref<2x128xf32, #tpu.memory_space<vmem>>, vector<2x128xf32>,
    return
  }
}

</mosaic_0001>

<bundles_post_ra>
// kernel: dueling_dqn_forward.3
= control target key start
LH: loop header
LB: loop body
LE: loop exit
PB: predicated region body
PF: predicated region fallthrough
CT: control target
= control target key end

     0   :  { %s836_s1 = inlined_call_operand.vmem [shape: bf16[256,128], index: 1, kind: input, shape index: {}]   ;;  %s837_s0 = inlined_call_operand.vmem [shape: bf16[128,256], index: 0, kind: input, shape index: {}]   ;;  %s838_s2 = inlined_call_operand.vmem [shape: f32[1,128], index: 2, kind: input, shape index: {}]   ;;  %s839_s3 = inlined_call_operand.vmem [shape: bf16[128,128], index: 3, kind: output, shape index: {}]  }
   0x1   :  { %v635_v0 = vld [vmem:[%s836_s1 + $0x40] sm:$0xff]   ;;  %v637_v2 = vld [vmem:[%s836_s1 + $0x48] sm:$0xff]   ;;  %v639_v4 = vld [vmem:[%s836_s1 + $0x50] sm:$0xff]  }
   0x2   :  { %v636_v1 = vld [vmem:[%s836_s1] sm:$0xff]   ;;  %555 = vmatprep.subr.bf16.mxu0 %v635_v0  ;;  %619 = vmatprep.subr.bf16.mxu1 %v635_v0  ;;  %v638_v3 = vld [vmem:[%s836_s1 + $0x8] sm:$0xff]   ;;  %v640_v5 = vld [vmem:[%s836_s1 + $0x10] sm:$0xff]  }
   0x3   :  { %556 = vmatpush3.bf16.msra.mxu0 %v636_v1  ;;  %627 = vmatpush3.bf16.msra.mxu1 %v636_v1  ;;  %v641_v6 = vld [vmem:[%s836_s1 + $0x58] sm:$0xff]   ;;  %v643_v8 = vld [vmem:[%s836_s1 + $0x60] sm:$0xff]   ;;  %v645_v10 = vld [vmem:[%s836_s1 + $0x68] sm:$0xff]  }
   0x4   :  { %557 = vmatprep.subr.bf16.mxu0 %v637_v2  ;;  %620 = vmatprep.subr.bf16.mxu1 %v637_v2  ;;  %v642_v7 = vld [vmem:[%s836_s1 + $0x18] sm:$0xff]   ;;  %v644_v9 = vld [vmem:[%s836_s1 + $0x20] sm:$0xff]   ;;  %v646_v13 = vld [vmem:[%s836_s1 + $0x28] sm:$0xff]  }
   0x5   :  { %v653_v11 = vld [vmem:[%s837_s0 + $0x4] ss:$8 sps:$4 sm:$0xff]   ;;  %v647_v14 = vld [vmem:[%s836_s1 + $0x70] sm:$0xff]   ;;  %v649_v16 = vld [vmem:[%s836_s1 + $0x78] sm:$0xff]  }
   0x6   :  { %v656_v12 = vld [vmem:[%s837_s0 + $0x44] ss:$8 sps:$4 sm:$0xff]   ;;  %278 = vmatprep.mubr.bf16.mxu0 %v653_v11  ;;  %v648_v15 = vld [vmem:[%s836_s1 + $0x30] sm:$0xff]   ;;  %v650_v17 = vld [vmem:[%s836_s1 + $0x38] sm:$0xff]  }
   0x7   :  { %558 = vmatpush3.bf16.msra.mxu0 %v638_v3  ;;  %628 = vmatpush3.bf16.msra.mxu1 %v638_v3  ;;  %v651_v18 = vld [vmem:[%s837_s0] ss:$8 sps:$4 sm:$0xff]   ;;  %v657_v20 = vld [vmem:[%s837_s0 + $0x14] ss:$8 sps:$4 sm:$0xff]   ;;  %v661_v22 = vld [vmem:[%s837_s0 + $0x10] ss:$8 sps:$4 sm:$0xff]  }
   0x8   :  { %559 = vmatprep.subr.bf16.mxu0 %v639_v4  ;;  %621 = vmatprep.subr.bf16.mxu1 %v639_v4  ;;  %v654_v19 = vld [vmem:[%s837_s0 + $0x40] ss:$8 sps:$4 sm:$0xff]   ;;  %v659_v21 = vld [vmem:[%s837_s0 + $0x54] ss:$8 sps:$4 sm:$0xff]   ;;  %v662_v23 = vld [vmem:[%s837_s0 + $0x50] ss:$8 sps:$4 sm:$0xff]  }
   0x9   :  { %310 = vmatprep.mubr.bf16.mxu1 %v656_v12  ;;  %v663_v24 = vld [vmem:[%s837_s0 + $0x24] ss:$8 sps:$4 sm:$0xff]   ;;  %v667_v26 = vld [vmem:[%s837_s0 + $0x20] ss:$8 sps:$4 sm:$0xff]   ;;  %v669_v28 = vld [vmem:[%s837_s0 + $0x34] ss:$8 sps:$4 sm:$0xff]  }
   0xa   :  { %v665_v25 = vld [vmem:[%s837_s0 + $0x64] ss:$8 sps:$4 sm:$0xff]   ;;  %v668_v27 = vld [vmem:[%s837_s0 + $0x60] ss:$8 sps:$4 sm:$0xff]   ;;  %v671_v29 = vld [vmem:[%s837_s0 + $0x74] ss:$8 sps:$4 sm:$0xff]  }
   0xb   :  { %560 = vmatpush3.bf16.msra.mxu0 %v640_v5  ;;  %629 = vmatpush3.bf16.msra.mxu1 %v640_v5  ;;  %v673_v30 = vld [vmem:[%s837_s0 + $0x30] ss:$8 sps:$4 sm:$0xff]   ;;  %v794_v34 = vld [vmem:[%s838_s2] ss:$0 sm:$0xff] }
   0xc   :  { %561 = vmatprep.subr.bf16.mxu0 %v641_v6  ;;  %622 = vmatprep.subr.bf16.mxu1 %v641_v6  ;;  %v674_v31 = vld [vmem:[%s837_s0 + $0x70] ss:$8 sps:$4 sm:$0xff]  }
   0xf   :  { %562 = vmatpush3.bf16.msra.mxu0 %v642_v7  ;;  %630 = vmatpush3.bf16.msra.mxu1 %v642_v7 }
  0x10   :  { %563 = vmatprep.subr.bf16.mxu0 %v643_v8  ;;  %623 = vmatprep.subr.bf16.mxu1 %v643_v8 }
  0x13   :  { %564 = vmatpush3.bf16.msra.mxu0 %v644_v9  ;;  %631 = vmatpush3.bf16.msra.mxu1 %v644_v9 }
  0x14   :  { %565 = vmatprep.subr.bf16.mxu0 %v645_v10  ;;  %624 = vmatprep.subr.bf16.mxu1 %v645_v10 }
  0x17   :  { %566 = vmatpush3.bf16.msra.mxu0 %v646_v13  ;;  %632 = vmatpush3.bf16.msra.mxu1 %v646_v13 }
  0x18   :  { %567 = vmatprep.subr.bf16.mxu0 %v647_v14  ;;  %625 = vmatprep.subr.bf16.mxu1 %v647_v14 }
  0x1b   :  { %568 = vmatpush3.bf16.msra.mxu0 %v648_v15  ;;  %633 = vmatpush3.bf16.msra.mxu1 %v648_v15 }
  0x1c   :  { %569 = vmatprep.subr.bf16.mxu0 %v649_v16  ;;  %626 = vmatprep.subr.bf16.mxu1 %v649_v16 }
  0x1f   :  { %570 = vmatpush3.bf16.msra.mxu0 %v650_v17  ;;  %634 = vmatpush3.bf16.msra.mxu1 %v650_v17 }
  0x22   :  { %279 = vmatmul.mubr.bf16.vlgmr.msra.gmra.mrb[0].mxu0 %v651_v18  ;;  %311 = vmatmul.mubr.bf16.vlgmr.msra.gmra.mrb[0].mxu1 %v654_v19 }
  0x23   :  { %286 = vmatprep.mubr.bf16.mxu0 %v657_v20  ;;  %318 = vmatprep.mubr.bf16.mxu1 %v659_v21 }
  0x2a   :  { %287 = vmatmul.mubr.bf16.gmra.mrb[4].mxu0 %v661_v22  ;;  %319 = vmatmul.mubr.bf16.gmra.mrb[4].mxu1 %v662_v23 }
  0x2b   :  { %294 = vmatprep.mubr.bf16.mxu0 %v663_v24  ;;  %326 = vmatprep.mubr.bf16.mxu1 %v665_v25 }
  0x32   :  { %295 = vmatmul.mubr.bf16.gmra.mrb[8].mxu0 %v667_v26  ;;  %327 = vmatmul.mubr.bf16.gmra.mrb[8].mxu1 %v668_v27 }
  0x33   :  { %302 = vmatprep.mubr.bf16.mxu0 %v669_v28  ;;  %334 = vmatprep.mubr.bf16.mxu1 %v671_v29 }
  0x3a   :  { %303 = vmatmul.mubr.bf16.gmra.mrb[12].mxu0 %v673_v30  ;;  %335 = vmatmul.mubr.bf16.gmra.mrb[12].mxu1 %v674_v31 }
  0xf5   :  { %v571_v32 = vpop.f32.mrb[0].mxu0  ;;  %v595_v33 = vpop.f32.mrb[0].mxu1 }
  0xf6   :  { %v572_v35 = vpop.f32.mrb[1].mxu0  ;;  %v596_v36 = vpop.f32.mrb[1].mxu1 }
  0xf7   :  { %v573_v37 = vadd.f32 %v572_v35, %v571_v32  ;;  %v597_v38 = vadd.f32 %v596_v36, %v595_v33  ;;  %v574_v39 = vpop.f32.mrb[2].mxu0  ;;  %v598_v40 = vpop.f32.mrb[2].mxu1 }
  0xf8   :  { %v575_v41 = vpop.f32.mrb[3].mxu0  ;;  %v599_v42 = vpop.f32.mrb[3].mxu1 }
  0xf9   :  { %v281_v43 = vadd.f32 %v573_v37, %v794_v34  ;;  %v313_v44 = vadd.f32 %v597_v38, %v794_v34  ;;  %v576_v45 = vadd.f32 %v575_v41, %v574_v39  ;;  %v600_v46 = vadd.f32 %v599_v42, %v598_v40 }
  0xfb   :  { %v284_v47 = vadd.f32 %v576_v45, %v794_v34  ;;  %v316_v48 = vadd.f32 %v600_v46, %v794_v34  ;;  %v343_v49 = vmax.f32 %v281_v43, 0.0  ;;  %v351_v50 = vmax.f32 %v313_v44, 0.0 }
  0xfd   :  { %v344_v51 = vmax.f32 %v284_v47, 0.0  ;;  %v352_v52 = vmax.f32 %v316_v48, 0.0  ;;  %v577_v53 = vpop.f32.mrb[4].mxu0  ;;  %v601_v54 = vpop.f32.mrb[4].mxu1 }
  0xfe   :  { %v578_v55 = vpop.f32.mrb[5].mxu0  ;;  %v602_v56 = vpop.f32.mrb[5].mxu1 }
  0xff   :  { %v511_v57 = vpack.c.bf16 %v344_v51, %v343_v49  ;;  %v531_v58 = vpack.c.bf16 %v352_v52, %v351_v50  ;;  %v579_v59 = vadd.f32 %v578_v55, %v577_v53  ;;  %v603_v60 = vadd.f32 %v602_v56, %v601_v54  ;;  %v580_v61 = vpop.f32.mrb[6].mxu0  ;;  %v604_v62 = vpop.f32.mrb[6].mxu1 }
 0x100   :  { %v581_v63 = vpop.f32.mrb[7].mxu0  ;;  %v605_v0 = vpop.f32.mrb[7].mxu1 }
 0x101   :  { %512 = vst [vmem:[%s839_s3] sm:$0xff] %v511_v57   ;;  %551 = vst [vmem:[%s839_s3 + $0x20] sm:$0xff] %v531_v58   ;;  %v289_v1 = vadd.f32 %v579_v59, %v794_v34  ;;  %v321_v2 = vadd.f32 %v603_v60, %v794_v34  ;;  %v582_v3 = vadd.f32 %v581_v63, %v580_v61 }
 0x102   :  { %v606_v4 = vadd.f32 %v605_v0, %v604_v62 }
 0x103   :  { %v292_v5 = vadd.f32 %v582_v3, %v794_v34  ;;  %v345_v7 = vmax.f32 %v289_v1, 0.0  ;;  %v353_v8 = vmax.f32 %v321_v2, 0.0 }
 0x104   :  { %v324_v6 = vadd.f32 %v606_v4, %v794_v34 }
 0x105   :  { %v346_v9 = vmax.f32 %v292_v5, 0.0  ;;  %v583_v11 = vpop.f32.mrb[8].mxu0  ;;  %v607_v12 = vpop.f32.mrb[8].mxu1 }
 0x106   :  { %v354_v10 = vmax.f32 %v324_v6, 0.0  ;;  %v584_v13 = vpop.f32.mrb[9].mxu0  ;;  %v608_v14 = vpop.f32.mrb[9].mxu1 }
 0x107   :  { %v516_v15 = vpack.c.bf16 %v346_v9, %v345_v7  ;;  %v585_v17 = vadd.f32 %v584_v13, %v583_v11  ;;  %v609_v18 = vadd.f32 %v608_v14, %v607_v12  ;;  %v586_v19 = vpop.f32.mrb[10].mxu0  ;;  %v610_v20 = vpop.f32.mrb[10].mxu1 }
 0x108   :  { %v536_v16 = vpack.c.bf16 %v354_v10, %v353_v8  ;;  %v587_v21 = vpop.f32.mrb[11].mxu0  ;;  %v611_v22 = vpop.f32.mrb[11].mxu1 }
 0x109   :  { %548 = vst [vmem:[%s839_s3 + $0x8] sm:$0xff] %v516_v15   ;;  %v297_v23 = vadd.f32 %v585_v17, %v794_v34  ;;  %v329_v24 = vadd.f32 %v609_v18, %v794_v34  ;;  %v588_v25 = vadd.f32 %v587_v21, %v586_v19  ;;  %v612_v26 = vadd.f32 %v611_v22, %v610_v20 }
 0x10a   :  { %552 = vst [vmem:[%s839_s3 + $0x28] sm:$0xff] %v536_v16  }
 0x10b   :  { %v300_v27 = vadd.f32 %v588_v25, %v794_v34  ;;  %v332_v28 = vadd.f32 %v612_v26, %v794_v34  ;;  %v347_v29 = vmax.f32 %v297_v23, 0.0  ;;  %v355_v30 = vmax.f32 %v329_v24, 0.0 }
 0x10d   :  { %v348_v31 = vmax.f32 %v300_v27, 0.0  ;;  %v356_v32 = vmax.f32 %v332_v28, 0.0  ;;  %v589_v33 = vpop.f32.mrb[12].mxu0  ;;  %v613_v35 = vpop.f32.mrb[12].mxu1 }
 0x10e   :  { %v590_v36 = vpop.f32.mrb[13].mxu0  ;;  %v614_v37 = vpop.f32.mrb[13].mxu1 }
 0x10f   :  { %v521_v38 = vpack.c.bf16 %v348_v31, %v347_v29  ;;  %v541_v39 = vpack.c.bf16 %v356_v32, %v355_v30  ;;  %v591_v40 = vadd.f32 %v590_v36, %v589_v33  ;;  %v615_v41 = vadd.f32 %v614_v37, %v613_v35  ;;  %v592_v42 = vpop.f32.mrb[14].mxu0  ;;  %v616_v43 = vpop.f32.mrb[14].mxu1 }
 0x110   :  { %v593_v44 = vpop.f32.mrb[15].mxu0  ;;  %v617_v45 = vpop.f32.mrb[15].mxu1 }
 0x111   :  { %549 = vst [vmem:[%s839_s3 + $0x10] sm:$0xff] %v521_v38   ;;  %553 = vst [vmem:[%s839_s3 + $0x30] sm:$0xff] %v541_v39   ;;  %v305_v46 = vadd.f32 %v591_v40, %v794_v34  ;;  %v337_v47 = vadd.f32 %v615_v41, %v794_v34  ;;  %v594_v48 = vadd.f32 %v593_v44, %v592_v42 }
 0x112   :  { %v618_v49 = vadd.f32 %v617_v45, %v616_v43 }
 0x113   :  { %v308_v50 = vadd.f32 %v594_v48, %v794_v34  ;;  %v349_v52 = vmax.f32 %v305_v46, 0.0  ;;  %v357_v53 = vmax.f32 %v337_v47, 0.0 }
 0x114   :  { %v340_v51 = vadd.f32 %v618_v49, %v794_v34 }
 0x115   :  { %v350_v54 = vmax.f32 %v308_v50, 0.0 }
 0x116   :  { %v358_v55 = vmax.f32 %v340_v51, 0.0 }
 0x117   :  { %v526_v56 = vpack.c.bf16 %v350_v54, %v349_v52 }
 0x118   :  { %v546_v57 = vpack.c.bf16 %v358_v55, %v357_v53 }
 0x119   :  { %550 = vst [vmem:[%s839_s3 + $0x18] sm:$0xff] %v526_v56  }
 0x11a   :  { %554 = vst [vmem:[%s839_s3 + $0x38] sm:$0xff] %v546_v57  }

// kernel: dueling_dqn_forward.4
= control target key start
LH: loop header
LB: loop body
LE: loop exit
PB: predicated region body
PF: predicated region fallthrough
CT: control target
= control target key end

     0   :  { %s2638_s1 = inlined_call_operand.vmem [shape: bf16[2048,128], index: 1, kind: input, shape index: {}]   ;;  %s2639_s0 = inlined_call_operand.vmem [shape: bf16[18,2048], index: 0, kind: input, shape index: {}]   ;;  %s2640_s2 = inlined_call_operand.vmem [shape: f32[1,128], index: 2, kind: input, shape index: {}]   ;;  %s2641_s3 = inlined_call_operand.vmem [shape: bf16[18,128], index: 3, kind: output, shape index: {}]  }
   0x1   :  { %v2009_v0 = vld [vmem:[%s2638_s1 + $0x40] sm:$0xff]   ;;  %v2013_v4 = vld [vmem:[%s2638_s1 + $0x48] sm:$0xff]   ;;  %v2017_v8 = vld [vmem:[%s2638_s1 + $0x50] sm:$0xff]  }
   0x2   :  { %v2010_v1 = vld [vmem:[%s2638_s1 + $0xc0] sm:$0xff]   ;;  %1785 = vmatprep.subr.bf16.mxu0 %v2009_v0  ;;  %v2014_v5 = vld [vmem:[%s2638_s1 + $0xc8] sm:$0xff]   ;;  %v2018_v9 = vld [vmem:[%s2638_s1 + $0xd0] sm:$0xff]  }
   0x3   :  { %v2011_v2 = vld [vmem:[%s2638_s1] sm:$0xff]   ;;  %1813 = vmatprep.subr.bf16.mxu1 %v2010_v1  ;;  %v2015_v6 = vld [vmem:[%s2638_s1 + $0x8] sm:$0xff]   ;;  %v2019_v10 = vld [vmem:[%s2638_s1 + $0x10] sm:$0xff]  }
   0x4   :  { %v2012_v3 = vld [vmem:[%s2638_s1 + $0x80] sm:$0xff]   ;;  %1786 = vmatpush3.bf16.msra.mxu0 %v2011_v2  ;;  %v2016_v7 = vld [vmem:[%s2638_s1 + $0x88] sm:$0xff]   ;;  %v2020_v11 = vld [vmem:[%s2638_s1 + $0x90] sm:$0xff]  }
   0x5   :  { %1814 = vmatpush3.bf16.msra.mxu1 %v2012_v3  ;;  %1787 = vmatprep.subr.bf16.mxu0 %v2013_v4  ;;  %v2021_v12 = vld [vmem:[%s2638_s1 + $0x58] sm:$0xff]   ;;  %v2025_v16 = vld [vmem:[%s2638_s1 + $0x60] sm:$0xff]   ;;  %v2029_v20 = vld [vmem:[%s2638_s1 + $0x68] sm:$0xff]  }
   0x6   :  { %1815 = vmatprep.subr.bf16.mxu1 %v2014_v5  ;;  %v2022_v13 = vld [vmem:[%s2638_s1 + $0xd8] sm:$0xff]   ;;  %v2026_v17 = vld [vmem:[%s2638_s1 + $0xe0] sm:$0xff]   ;;  %v2030_v21 = vld [vmem:[%s2638_s1 + $0xe8] sm:$0xff]  }
   0x7   :  { %v2023_v14 = vld [vmem:[%s2638_s1 + $0x18] sm:$0xff]   ;;  %v2027_v18 = vld [vmem:[%s2638_s1 + $0x20] sm:$0xff]   ;;  %v2031_v22 = vld [vmem:[%s2638_s1 + $0x28] sm:$0xff]  }
   0x8   :  { %1788 = vmatpush3.bf16.msra.mxu0 %v2015_v6  ;;  %v2024_v15 = vld [vmem:[%s2638_s1 + $0x98] sm:$0xff]   ;;  %v2028_v19 = vld [vmem:[%s2638_s1 + $0xa0] sm:$0xff]   ;;  %v2032_v23 = vld [vmem:[%s2638_s1 + $0xa8] sm:$0xff]  }
   0x9   :  { %1816 = vmatpush3.bf16.msra.mxu1 %v2016_v7  ;;  %1789 = vmatprep.subr.bf16.mxu0 %v2017_v8  ;;  %v2033_v24 = vld [vmem:[%s2638_s1 + $0x70] sm:$0xff]   ;;  %v2037_v28 = vld [vmem:[%s2638_s1 + $0x78] sm:$0xff]   ;;  %v15_v32 = vld [vmem:[%s2639_s0] sm:$0xff] }
   0xa   :  { %1817 = vmatprep.subr.bf16.mxu1 %v2018_v9  ;;  %v2034_v25 = vld [vmem:[%s2638_s1 + $0xf0] sm:$0xff]   ;;  %v2038_v29 = vld [vmem:[%s2638_s1 + $0xf8] sm:$0xff]   ;;  %v23_v33 = vld [vmem:[%s2639_s0 + $0x40] sm:$0xff] }
   0xb   :  { %v2035_v26 = vld [vmem:[%s2638_s1 + $0x30] sm:$0xff]   ;;  %v2039_v30 = vld [vmem:[%s2638_s1 + $0x38] sm:$0xff]   ;;  %v16_v34 = vld [vmem:[%s2639_s0 + $0x8] sm:$0xff]  ;;  %v1614_v35 = vcombine.low %v15_v32, %v23_v33  ;;  %v1615_v36 = vcombine.high %v15_v32, %v23_v33 }
   0xc   :  { %1790 = vmatpush3.bf16.msra.mxu0 %v2019_v10  ;;  %v2036_v27 = vld [vmem:[%s2638_s1 + $0xb0] sm:$0xff]   ;;  %v2040_v31 = vld [vmem:[%s2638_s1 + $0xb8] sm:$0xff]   ;;  %v24_v37 = vld [vmem:[%s2639_s0 + $0x48] sm:$0xff] }
   0xd   :  { %1818 = vmatpush3.bf16.msra.mxu1 %v2020_v11  ;;  %1791 = vmatprep.subr.bf16.mxu0 %v2021_v12  ;;  %v1616_v38 = vcombine.low %v16_v34, %v24_v37  ;;  %v1617_v39 = vcombine.high %v16_v34, %v24_v37  ;;  %v2041_v40 = vld [vmem:[%s2638_s1 + $0x140] sm:$0xff]   ;;  %v2045_v44 = vld [vmem:[%s2638_s1 + $0x148] sm:$0xff]   ;;  %v2049_v48 = vld [vmem:[%s2638_s1 + $0x150] sm:$0xff]  }
   0xe   :  { %1819 = vmatprep.subr.bf16.mxu1 %v2022_v13  ;;  %1238 = vmatprep.mubr.bf16.mxu0 %v1615_v36  ;;  %v2042_v41 = vld [vmem:[%s2638_s1 + $0x1c0] sm:$0xff]   ;;  %v2046_v45 = vld [vmem:[%s2638_s1 + $0x1c8] sm:$0xff]   ;;  %v2050_v49 = vld [vmem:[%s2638_s1 + $0x1d0] sm:$0xff]  }
   0xf   :  { %1286 = vmatprep.mubr.bf16.mxu1 %v1617_v39  ;;  %v2043_v42 = vld [vmem:[%s2638_s1 + $0x100] sm:$0xff]   ;;  %v2047_v46 = vld [vmem:[%s2638_s1 + $0x108] sm:$0xff]   ;;  %v2051_v50 = vld [vmem:[%s2638_s1 + $0x110] sm:$0xff]  }
  0x10   :  { %1792 = vmatpush3.bf16.msra.mxu0 %v2023_v14  ;;  %v2044_v43 = vld [vmem:[%s2638_s1 + $0x180] sm:$0xff]   ;;  %v2048_v47 = vld [vmem:[%s2638_s1 + $0x188] sm:$0xff]   ;;  %v2052_v51 = vld [vmem:[%s2638_s1 + $0x190] sm:$0xff]  }
  0x11   :  { %1820 = vmatpush3.bf16.msra.mxu1 %v2024_v15  ;;  %1793 = vmatprep.subr.bf16.mxu0 %v2025_v16  ;;  %v2053_v52 = vld [vmem:[%s2638_s1 + $0x158] sm:$0xff]   ;;  %v2057_v56 = vld [vmem:[%s2638_s1 + $0x160] sm:$0xff]   ;;  %v2061_v60 = vld [vmem:[%s2638_s1 + $0x168] sm:$0xff]  }
  0x12   :  { %1821 = vmatprep.subr.bf16.mxu1 %v2026_v17  ;;  %v2054_v53 = vld [vmem:[%s2638_s1 + $0x1d8] sm:$0xff]   ;;  %v2058_v57 = vld [vmem:[%s2638_s1 + $0x1e0] sm:$0xff]   ;;  %v2062_v61 = vld [vmem:[%s2638_s1 + $0x1e8] sm:$0xff]  }
  0x13   :  { %v2055_v54 = vld [vmem:[%s2638_s1 + $0x118] sm:$0xff]   ;;  %v2059_v58 = vld [vmem:[%s2638_s1 + $0x120] sm:$0xff]   ;;  %v2064_v0 = vld [vmem:[%s2638_s1 + $0x128] sm:$0xff]  }
  0x14   :  { %1794 = vmatpush3.bf16.msra.mxu0 %v2027_v18  ;;  %v2056_v55 = vld [vmem:[%s2638_s1 + $0x198] sm:$0xff]   ;;  %v2060_v59 = vld [vmem:[%s2638_s1 + $0x1a0] sm:$0xff]   ;;  %v2065_v2 = vld [vmem:[%s2638_s1 + $0x1a8] sm:$0xff]  }
  0x15   :  { %1822 = vmatpush3.bf16.msra.mxu1 %v2028_v19  ;;  %1795 = vmatprep.subr.bf16.mxu0 %v2029_v20  ;;  %v31_v62 = vld [vmem:[%s2639_s0 + $0x80] sm:$0x11]  ;;  %v32_v3 = vld [vmem:[%s2639_s0 + $0x88] sm:$0x11]  ;;  %v2069_v6 = vld [vmem:[%s2638_s1 + $0x170] sm:$0xff]  }
  0x16   :  { %1823 = vmatprep.subr.bf16.mxu1 %v2030_v21  ;;  %v1631_v63 = vcombine.high %v31_v62, %v31_v62  ;;  %v1630_v1 = vcombine.low %v31_v62, %v31_v62  ;;  %v1633_v4 = vcombine.high %v32_v3, %v32_v3  ;;  %v1632_v5 = vcombine.low %v32_v3, %v32_v3  ;;  %v2070_v7 = vld [vmem:[%s2638_s1 + $0x1f0] sm:$0xff]   ;;  %v2073_v10 = vld [vmem:[%s2638_s1 + $0x178] sm:$0xff]   ;;  %v20_v62 = vld [vmem:[%s2639_s0 + $0x28] sm:$0xff] }
  0x17   :  { %v2071_v8 = vld [vmem:[%s2638_s1 + $0x130] sm:$0xff]   ;;  %v2074_v11 = vld [vmem:[%s2638_s1 + $0x1f8] sm:$0xff]  }
  0x18   :  { %1796 = vmatpush3.bf16.msra.mxu0 %v2031_v22  ;;  %v2072_v9 = vld [vmem:[%s2638_s1 + $0x1b0] sm:$0xff]   ;;  %v2075_v12 = vld [vmem:[%s2638_s1 + $0x138] sm:$0xff]   ;;  %v2077_v22 = vld [vmem:[%s2638_s1 + $0x240] sm:$0xff]  }
  0x19   :  { %1824 = vmatpush3.bf16.msra.mxu1 %v2032_v23  ;;  %1797 = vmatprep.subr.bf16.mxu0 %v2033_v24  ;;  %v2076_v13 = vld [vmem:[%s2638_s1 + $0x1b8] sm:$0xff]   ;;  %v17_v14 = vld [vmem:[%s2639_s0 + $0x10] sm:$0xff]  ;;  %v2078_v23 = vld [vmem:[%s2638_s1 + $0x2c0] sm:$0xff]  }
  0x1a   :  { %1825 = vmatprep.subr.bf16.mxu1 %v2034_v25  ;;  %v25_v15 = vld [vmem:[%s2639_s0 + $0x50] sm:$0xff]  ;;  %v18_v16 = vld [vmem:[%s2639_s0 + $0x18] sm:$0xff]  ;;  %v2079_v24 = vld [vmem:[%s2638_s1 + $0x200] sm:$0xff]  }
  0x1b   :  { %v1618_v17 = vcombine.low %v17_v14, %v25_v15  ;;  %v1619_v18 = vcombine.high %v17_v14, %v25_v15  ;;  %v26_v19 = vld [vmem:[%s2639_s0 + $0x58] sm:$0xff]  ;;  %v2080_v25 = vld [vmem:[%s2638_s1 + $0x280] sm:$0xff]   ;;  %v2087_v33 = vld [vmem:[%s2638_s1 + $0x250] sm:$0xff]  }
  0x1c   :  { %1798 = vmatpush3.bf16.msra.mxu0 %v2035_v26  ;;  %v1620_v20 = vcombine.low %v18_v16, %v26_v19  ;;  %v1621_v21 = vcombine.high %v18_v16, %v26_v19  ;;  %v2081_v26 = vld [vmem:[%s2638_s1 + $0x248] sm:$0xff]   ;;  %v2088_v34 = vld [vmem:[%s2638_s1 + $0x2d0] sm:$0xff]  }
  0x1d   :  { %1826 = vmatpush3.bf16.msra.mxu1 %v2036_v27  ;;  %1799 = vmatprep.subr.bf16.mxu0 %v2037_v28  ;;  %v2082_v27 = vld [vmem:[%s2638_s1 + $0x2c8] sm:$0xff]   ;;  %v2090_v37 = vld [vmem:[%s2638_s1 + $0x210] sm:$0xff]  }
  0x1e   :  { %1827 = vmatprep.subr.bf16.mxu1 %v2038_v29  ;;  %v2083_v28 = vld [vmem:[%s2638_s1 + $0x208] sm:$0xff]   ;;  %v2091_v39 = vld [vmem:[%s2638_s1 + $0x290] sm:$0xff]  }
  0x1f   :  { %v2084_v29 = vld [vmem:[%s2638_s1 + $0x288] sm:$0xff]   ;;  %v2123_v15 = vld [vmem:[%s2638_s1 + $0x350] sm:$0xff]  }
  0x20   :  { %1800 = vmatpush3.bf16.msra.mxu0 %v2039_v30  ;;  %v33_v30 = vld [vmem:[%s2639_s0 + $0x90] sm:$0x11] }
  0x21   :  { %1828 = vmatpush3.bf16.msra.mxu1 %v2040_v31  ;;  %1841 = vmatprep.subr.bf16.mxu0 %v2041_v40  ;;  %v1635_v31 = vcombine.high %v33_v30, %v33_v30  ;;  %v1634_v32 = vcombine.low %v33_v30, %v33_v30  ;;  %v2093_v40 = vld [vmem:[%s2638_s1 + $0x258] sm:$0xff]   ;;  %v2124_v16 = vld [vmem:[%s2638_s1 + $0x3d0] sm:$0xff]   ;;  %v2137_v30 = vld [vmem:[%s2638_s1 + $0x368] sm:$0xff]  }
  0x22   :  { %1869 = vmatprep.subr.bf16.mxu1 %v2042_v41  ;;  %v2094_v41 = vld [vmem:[%s2638_s1 + $0x2d8] sm:$0xff]   ;;  %v2126_v19 = vld [vmem:[%s2638_s1 + $0x310] sm:$0xff]  }
  0x23   :  { %1239 = vmatmul.mubr.bf16.vlgmr.msra.gmra.mrb[0].mxu0 %v1614_v35  ;;  %v34_v35 = vld [vmem:[%s2639_s0 + $0x98] sm:$0x11] }
  0x24   :  { %1287 = vmatmul.mubr.bf16.vlgmr.msra.gmra.mrb[0].mxu1 %v1616_v38  ;;  %1842 = vmatpush3.bf16.msra.mxu0 %v2043_v42  ;;  %v1637_v36 = vcombine.high %v34_v35, %v34_v35  ;;  %v1636_v38 = vcombine.low %v34_v35, %v34_v35  ;;  %v2095_v42 = vld [vmem:[%s2638_s1 + $0x218] sm:$0xff]   ;;  %v2142_v35 = vld [vmem:[%s2638_s1 + $0x3f0] sm:$0xff]  }
  0x25   :  { %1870 = vmatpush3.bf16.msra.mxu1 %v2044_v43  ;;  %1843 = vmatprep.subr.bf16.mxu0 %v2045_v44  ;;  %v2096_v43 = vld [vmem:[%s2638_s1 + $0x298] sm:$0xff]   ;;  %v2097_v44 = vld [vmem:[%s2638_s1 + $0x260] sm:$0xff]  }
  0x26   :  { %1871 = vmatprep.subr.bf16.mxu1 %v2046_v45  ;;  %1246 = vmatprep.mubr.bf16.mxu0 %v1631_v63  ;;  %v2098_v45 = vld [vmem:[%s2638_s1 + $0x2e0] sm:$0xff]  }
  0x27   :  { %1294 = vmatprep.mubr.bf16.mxu1 %v1633_v4  ;;  %v2113_v4 = vld [vmem:[%s2638_s1 + $0x340] sm:$0xff]  }
  0x28   :  { %1844 = vmatpush3.bf16.msra.mxu0 %v2047_v46  ;;  %v2099_v46 = vld [vmem:[%s2638_s1 + $0x220] sm:$0xff]  }
  0x29   :  { %1872 = vmatpush3.bf16.msra.mxu1 %v2048_v47  ;;  %1845 = vmatprep.subr.bf16.mxu0 %v2049_v48  ;;  %v2100_v47 = vld [vmem:[%s2638_s1 + $0x2a0] sm:$0xff]   ;;  %v2101_v48 = vld [vmem:[%s2638_s1 + $0x268] sm:$0xff]  }
  0x2a   :  { %1873 = vmatprep.subr.bf16.mxu1 %v2050_v49  ;;  %v2102_v49 = vld [vmem:[%s2638_s1 + $0x2e8] sm:$0xff]  }
  0x2b   :  { %1247 = vmatmul.mubr.bf16.gmra.mrb[4].mxu0 %v1630_v1  ;;  %v28_v1 = vld [vmem:[%s2639_s0 + $0x68] sm:$0xff] }
  0x2c   :  { %1846 = vmatpush3.bf16.msra.mxu0 %v2051_v50  ;;  %1295 = vmatmul.mubr.bf16.gmra.mrb[4].mxu1 %v1632_v5  ;;  %v2103_v50 = vld [vmem:[%s2638_s1 + $0x228] sm:$0xff]   ;;  %v1625_v3 = vcombine.high %v20_v62, %v28_v1  ;;  %v2114_v5 = vld [vmem:[%s2638_s1 + $0x3c0] sm:$0xff]  }
  0x2d   :  { %1874 = vmatpush3.bf16.msra.mxu1 %v2052_v51  ;;  %1847 = vmatprep.subr.bf16.mxu0 %v2053_v52  ;;  %v2104_v51 = vld [vmem:[%s2638_s1 + $0x2a8] sm:$0xff]   ;;  %v2105_v52 = vld [vmem:[%s2638_s1 + $0x270] sm:$0xff]  }
  0x2e   :  { %1875 = vmatprep.subr.bf16.mxu1 %v2054_v53  ;;  %1334 = vmatprep.mubr.bf16.mxu0 %v1619_v18  ;;  %v2106_v53 = vld [vmem:[%s2638_s1 + $0x2f0] sm:$0xff]  }
  0x2f   :  { %1382 = vmatprep.mubr.bf16.mxu1 %v1621_v21  ;;  %v2127_v21 = vld [vmem:[%s2638_s1 + $0x390] sm:$0xff]  }
  0x30   :  { %1848 = vmatpush3.bf16.msra.mxu0 %v2055_v54  ;;  %v2107_v54 = vld [vmem:[%s2638_s1 + $0x230] sm:$0xff]  }
  0x31   :  { %1876 = vmatpush3.bf16.msra.mxu1 %v2056_v55  ;;  %1849 = vmatprep.subr.bf16.mxu0 %v2057_v56  ;;  %v2108_v55 = vld [vmem:[%s2638_s1 + $0x2b0] sm:$0xff]   ;;  %v2109_v56 = vld [vmem:[%s2638_s1 + $0x278] sm:$0xff]  }
  0x32   :  { %1877 = vmatprep.subr.bf16.mxu1 %v2058_v57  ;;  %v2110_v57 = vld [vmem:[%s2638_s1 + $0x2f8] sm:$0xff]  }
  0x34   :  { %1850 = vmatpush3.bf16.msra.mxu0 %v2059_v58  ;;  %v2111_v58 = vld [vmem:[%s2638_s1 + $0x238] sm:$0xff]  }
  0x35   :  { %1878 = vmatpush3.bf16.msra.mxu1 %v2060_v59  ;;  %1851 = vmatprep.subr.bf16.mxu0 %v2061_v60  ;;  %v2112_v59 = vld [vmem:[%s2638_s1 + $0x2b8] sm:$0xff]   ;;  %v19_v60 = vld [vmem:[%s2639_s0 + $0x20] sm:$0xff] }
  0x36   :  { %1879 = vmatprep.subr.bf16.mxu1 %v2062_v61  ;;  %v27_v61 = vld [vmem:[%s2639_s0 + $0x60] sm:$0xff] }
  0x37   :  { %v1622_v63 = vcombine.low %v19_v60, %v27_v61 }
  0x38   :  { %1852 = vmatpush3.bf16.msra.mxu0 %v2064_v0  ;;  %v1623_v0 = vcombine.high %v19_v60, %v27_v61 }
  0x39   :  { %1880 = vmatpush3.bf16.msra.mxu1 %v2065_v2  ;;  %1853 = vmatprep.subr.bf16.mxu0 %v2069_v6  ;;  %v1624_v2 = vcombine.low %v20_v62, %v28_v1  ;;  %v2115_v6 = vld [vmem:[%s2638_s1 + $0x300] sm:$0xff]  }
  0x3a   :  { %1881 = vmatprep.subr.bf16.mxu1 %v2070_v7  ;;  %v2116_v7 = vld [vmem:[%s2638_s1 + $0x380] sm:$0xff]  }
  0x3c   :  { %1854 = vmatpush3.bf16.msra.mxu0 %v2071_v8  ;;  %v2117_v8 = vld [vmem:[%s2638_s1 + $0x348] sm:$0xff]  }
  0x3d   :  { %1882 = vmatpush3.bf16.msra.mxu1 %v2072_v9  ;;  %1855 = vmatprep.subr.bf16.mxu0 %v2073_v10  ;;  %v2118_v9 = vld [vmem:[%s2638_s1 + $0x3c8] sm:$0xff]  }
  0x3e   :  { %1883 = vmatprep.subr.bf16.mxu1 %v2074_v11  ;;  %v2119_v10 = vld [vmem:[%s2638_s1 + $0x308] sm:$0xff]  }
  0x3f   :  { %v2120_v11 = vld [vmem:[%s2638_s1 + $0x388] sm:$0xff]  }
  0x40   :  { %1856 = vmatpush3.bf16.msra.mxu0 %v2075_v12  ;;  %v35_v12 = vld [vmem:[%s2639_s0 + $0xa0] sm:$0x11] }
  0x41   :  { %1884 = vmatpush3.bf16.msra.mxu1 %v2076_v13  ;;  %1897 = vmatprep.subr.bf16.mxu0 %v2077_v22  ;;  %v1639_v13 = vcombine.high %v35_v12, %v35_v12  ;;  %v1638_v14 = vcombine.low %v35_v12, %v35_v12  ;;  %v2129_v22 = vld [vmem:[%s2638_s1 + $0x358] sm:$0xff]  }
  0x42   :  { %1925 = vmatprep.subr.bf16.mxu1 %v2078_v23  ;;  %v2130_v23 = vld [vmem:[%s2638_s1 + $0x3d8] sm:$0xff]  }
  0x43   :  { %1335 = vmatmul.mubr.bf16.vlgmr.msra.gmra.mrb[8].mxu0 %v1618_v17  ;;  %v36_v17 = vld [vmem:[%s2639_s0 + $0xa8] sm:$0x11] }
  0x44   :  { %1383 = vmatmul.mubr.bf16.vlgmr.msra.gmra.mrb[8].mxu1 %v1620_v20  ;;  %1898 = vmatpush3.bf16.msra.mxu0 %v2079_v24  ;;  %v1641_v18 = vcombine.high %v36_v17, %v36_v17  ;;  %v1640_v20 = vcombine.low %v36_v17, %v36_v17  ;;  %v2131_v24 = vld [vmem:[%s2638_s1 + $0x318] sm:$0xff]  }
  0x45   :  { %1926 = vmatpush3.bf16.msra.mxu1 %v2080_v25  ;;  %1899 = vmatprep.subr.bf16.mxu0 %v2081_v26  ;;  %v2132_v25 = vld [vmem:[%s2638_s1 + $0x398] sm:$0xff]   ;;  %v2133_v26 = vld [vmem:[%s2638_s1 + $0x360] sm:$0xff]  }
  0x46   :  { %1927 = vmatprep.subr.bf16.mxu1 %v2082_v27  ;;  %1342 = vmatprep.mubr.bf16.mxu0 %v1635_v31  ;;  %v2134_v27 = vld [vmem:[%s2638_s1 + $0x3e0] sm:$0xff]   ;;  %v2138_v31 = vld [vmem:[%s2638_s1 + $0x3e8] sm:$0xff]  }
  0x47   :  { %1390 = vmatprep.mubr.bf16.mxu1 %v1637_v36  ;;  %v2143_v36 = vld [vmem:[%s2638_s1 + $0x330] sm:$0xff]  }
  0x48   :  { %1900 = vmatpush3.bf16.msra.mxu0 %v2083_v28  ;;  %v2135_v28 = vld [vmem:[%s2638_s1 + $0x320] sm:$0xff]  }
  0x49   :  { %1928 = vmatpush3.bf16.msra.mxu1 %v2084_v29  ;;  %1901 = vmatprep.subr.bf16.mxu0 %v2087_v33  ;;  %v2136_v29 = vld [vmem:[%s2638_s1 + $0x3a0] sm:$0xff]   ;;  %v2140_v33 = vld [vmem:[%s2638_s1 + $0x3a8] sm:$0xff]  }
  0x4a   :  { %1929 = vmatprep.subr.bf16.mxu1 %v2088_v34  ;;  %v2141_v34 = vld [vmem:[%s2638_s1 + $0x370] sm:$0xff]  }
  0x4b   :  { %1343 = vmatmul.mubr.bf16.gmra.mrb[12].mxu0 %v1634_v32  ;;  %v2139_v32 = vld [vmem:[%s2638_s1 + $0x328] sm:$0xff]  }
  0x4c   :  { %1902 = vmatpush3.bf16.msra.mxu0 %v2090_v37  ;;  %1391 = vmatmul.mubr.bf16.gmra.mrb[12].mxu1 %v1636_v38  ;;  %v2144_v37 = vld [vmem:[%s2638_s1 + $0x3b0] sm:$0xff]   ;;  %v2145_v38 = vld [vmem:[%s2638_s1 + $0x378] sm:$0xff]  }
  0x4d   :  { %1930 = vmatpush3.bf16.msra.mxu1 %v2091_v39  ;;  %1903 = vmatprep.subr.bf16.mxu0 %v2093_v40  ;;  %v2146_v39 = vld [vmem:[%s2638_s1 + $0x3f8] sm:$0xff]  }
  0x4e   :  { %1931 = vmatprep.subr.bf16.mxu1 %v2094_v41  ;;  %1430 = vmatprep.mubr.bf16.mxu0 %v1623_v0  ;;  %v2147_v40 = vld [vmem:[%s2638_s1 + $0x338] sm:$0xff]  }
  0x4f   :  { %1478 = vmatprep.mubr.bf16.mxu1 %v1625_v3  ;;  %v2148_v41 = vld [vmem:[%s2638_s1 + $0x3b8] sm:$0xff]  }
  0x50   :  { %1904 = vmatpush3.bf16.msra.mxu0 %v2095_v42  ;;  %v21_v42 = vld [vmem:[%s2639_s0 + $0x30] sm:$0xff] }
  0x51   :  { %1932 = vmatpush3.bf16.msra.mxu1 %v2096_v43  ;;  %1905 = vmatprep.subr.bf16.mxu0 %v2097_v44  ;;  %v29_v43 = vld [vmem:[%s2639_s0 + $0x70] sm:$0xff]  ;;  %v22_v44 = vld [vmem:[%s2639_s0 + $0x38] sm:$0xff] }
  0x52   :  { %1933 = vmatprep.subr.bf16.mxu1 %v2098_v45  ;;  %v1626_v45 = vcombine.low %v21_v42, %v29_v43 }
  0x54   :  { %1906 = vmatpush3.bf16.msra.mxu0 %v2099_v46  ;;  %v1627_v46 = vcombine.high %v21_v42, %v29_v43 }
  0x55   :  { %1934 = vmatpush3.bf16.msra.mxu1 %v2100_v47  ;;  %1907 = vmatprep.subr.bf16.mxu0 %v2101_v48  ;;  %v30_v47 = vld [vmem:[%s2639_s0 + $0x78] sm:$0xff]  ;;  %v37_v48 = vld [vmem:[%s2639_s0 + $0xb0] sm:$0x11] }
  0x56   :  { %1935 = vmatprep.subr.bf16.mxu1 %v2102_v49  ;;  %v38_v49 = vld [vmem:[%s2639_s0 + $0xb8] sm:$0x11] }
  0x58   :  { %1908 = vmatpush3.bf16.msra.mxu0 %v2103_v50  ;;  %v1628_v50 = vcombine.low %v22_v44, %v30_v47 }
  0x59   :  { %1936 = vmatpush3.bf16.msra.mxu1 %v2104_v51  ;;  %1909 = vmatprep.subr.bf16.mxu0 %v2105_v52  ;;  %v1629_v51 = vcombine.high %v22_v44, %v30_v47  ;;  %v1643_v52 = vcombine.high %v37_v48, %v37_v48 }
  0x5a   :  { %1937 = vmatprep.subr.bf16.mxu1 %v2106_v53  ;;  %v1645_v53 = vcombine.high %v38_v49, %v38_v49 }
  0x5c   :  { %1910 = vmatpush3.bf16.msra.mxu0 %v2107_v54  ;;  %v1642_v54 = vcombine.low %v37_v48, %v37_v48 }
  0x5d   :  { %1938 = vmatpush3.bf16.msra.mxu1 %v2108_v55  ;;  %1911 = vmatprep.subr.bf16.mxu0 %v2109_v56  ;;  %v1644_v55 = vcombine.low %v38_v49, %v38_v49 }
  0x5e   :  { %1939 = vmatprep.subr.bf16.mxu1 %v2110_v57 }
  0x60   :  { %1912 = vmatpush3.bf16.msra.mxu0 %v2111_v58  ;;  %v1613_v58 = vld [vmem:[%s2640_s2] ss:$0 sm:$0xff] }
  0x61   :  { %1940 = vmatpush3.bf16.msra.mxu1 %v2112_v59  ;;  %1953 = vmatprep.subr.bf16.mxu0 %v2113_v4 }
  0x62   :  { %1981 = vmatprep.subr.bf16.mxu1 %v2114_v5 }
  0x63   :  { %1431 = vmatmul.mubr.bf16.vlgmr.msra.gmra.mrb[16].mxu0 %v1622_v63 }
  0x64   :  { %1479 = vmatmul.mubr.bf16.vlgmr.msra.gmra.mrb[16].mxu1 %v1624_v2  ;;  %1954 = vmatpush3.bf16.msra.mxu0 %v2115_v6 }
  0x65   :  { %1982 = vmatpush3.bf16.msra.mxu1 %v2116_v7  ;;  %1955 = vmatprep.subr.bf16.mxu0 %v2117_v8 }
  0x66   :  { %1983 = vmatprep.subr.bf16.mxu1 %v2118_v9  ;;  %1438 = vmatprep.mubr.bf16.mxu0 %v1639_v13 }
  0x67   :  { %1486 = vmatprep.mubr.bf16.mxu1 %v1641_v18 }
  0x68   :  { %1956 = vmatpush3.bf16.msra.mxu0 %v2119_v10 }
  0x69   :  { %1984 = vmatpush3.bf16.msra.mxu1 %v2120_v11  ;;  %1957 = vmatprep.subr.bf16.mxu0 %v2123_v15 }
  0x6a   :  { %1985 = vmatprep.subr.bf16.mxu1 %v2124_v16 }
  0x6b   :  { %1439 = vmatmul.mubr.bf16.gmra.mrb[20].mxu0 %v1638_v14 }
  0x6c   :  { %1958 = vmatpush3.bf16.msra.mxu0 %v2126_v19  ;;  %1487 = vmatmul.mubr.bf16.gmra.mrb[20].mxu1 %v1640_v20 }
  0x6d   :  { %1986 = vmatpush3.bf16.msra.mxu1 %v2127_v21  ;;  %1959 = vmatprep.subr.bf16.mxu0 %v2129_v22 }
  0x6e   :  { %1987 = vmatprep.subr.bf16.mxu1 %v2130_v23  ;;  %1526 = vmatprep.mubr.bf16.mxu0 %v1627_v46 }
  0x6f   :  { %1574 = vmatprep.mubr.bf16.mxu1 %v1629_v51 }
  0x70   :  { %1960 = vmatpush3.bf16.msra.mxu0 %v2131_v24 }
  0x71   :  { %1988 = vmatpush3.bf16.msra.mxu1 %v2132_v25  ;;  %1961 = vmatprep.subr.bf16.mxu0 %v2133_v26 }
  0x72   :  { %1989 = vmatprep.subr.bf16.mxu1 %v2134_v27 }
  0x74   :  { %1962 = vmatpush3.bf16.msra.mxu0 %v2135_v28 }
  0x75   :  { %1990 = vmatpush3.bf16.msra.mxu1 %v2136_v29  ;;  %1963 = vmatprep.subr.bf16.mxu0 %v2137_v30 }
  0x76   :  { %1991 = vmatprep.subr.bf16.mxu1 %v2138_v31 }
  0x78   :  { %1964 = vmatpush3.bf16.msra.mxu0 %v2139_v32 }
  0x79   :  { %1992 = vmatpush3.bf16.msra.mxu1 %v2140_v33  ;;  %1965 = vmatprep.subr.bf16.mxu0 %v2141_v34 }
  0x7a   :  { %1993 = vmatprep.subr.bf16.mxu1 %v2142_v35 }
  0x7c   :  { %1966 = vmatpush3.bf16.msra.mxu0 %v2143_v36 }
  0x7d   :  { %1994 = vmatpush3.bf16.msra.mxu1 %v2144_v37  ;;  %1967 = vmatprep.subr.bf16.mxu0 %v2145_v38 }
  0x7e   :  { %1995 = vmatprep.subr.bf16.mxu1 %v2146_v39 }
  0x80   :  { %1968 = vmatpush3.bf16.msra.mxu0 %v2147_v40 }
  0x81   :  { %1996 = vmatpush3.bf16.msra.mxu1 %v2148_v41 }
  0x83   :  { %1527 = vmatmul.mubr.bf16.vlgmr.msra.gmra.mrb[24].mxu0 %v1626_v45 }
  0x84   :  { %1575 = vmatmul.mubr.bf16.vlgmr.msra.gmra.mrb[24].mxu1 %v1628_v50  ;;  %1534 = vmatprep.mubr.bf16.mxu0 %v1643_v52 }
  0x85   :  { %1582 = vmatprep.mubr.bf16.mxu1 %v1645_v53 }
  0x8b   :  { %1535 = vmatmul.mubr.bf16.gmra.mrb[28].mxu0 %v1642_v54 }
  0x8c   :  { %1583 = vmatmul.mubr.bf16.gmra.mrb[28].mxu1 %v1644_v55 }
  0xf6   :  { %v1801_v56 = vpop.f32.mrb[0].mxu0 }
  0xf7   :  { %v1829_v57 = vpop.f32.mrb[0].mxu1  ;;  %v1802_v59 = vpop.f32.mrb[1].mxu0 }
  0xf8   :  { %v1803_v60 = vadd.f32 %v1802_v59, %v1801_v56  ;;  %v1830_v61 = vpop.f32.mrb[1].mxu1  ;;  %v1804_v62 = vpop.f32.mrb[2].mxu0 }
  0xf9   :  { %v1831_v63 = vadd.f32 %v1830_v61, %v1829_v57  ;;  %v1832_v0 = vpop.f32.mrb[2].mxu1  ;;  %v1805_v1 = vpop.f32.mrb[3].mxu0 }
  0xfa   :  { %v1241_v2 = vadd.f32 %v1803_v60, %v1613_v58  ;;  %v1806_v3 = vadd.f32 %v1805_v1, %v1804_v62  ;;  %v1833_v4 = vpop.f32.mrb[3].mxu1 }
  0xfb   :  { %v1834_v5 = vadd.f32 %v1833_v4, %v1832_v0 }
  0xfc   :  { %v1289_v6 = vadd.f32 %v1831_v63, %v1241_v2  ;;  %v1244_v7 = vadd.f32 %v1806_v3, %v1613_v58 }
  0xfe   :  { %v1292_v8 = vadd.f32 %v1834_v5, %v1244_v7  ;;  %v1807_v9 = vpop.f32.mrb[4].mxu0 }
  0xff   :  { %v1808_v10 = vpop.f32.mrb[5].mxu0  ;;  %v1835_v13 = vpop.f32.mrb[4].mxu1 }
 0x100   :  { %v1809_v11 = vadd.f32 %v1808_v10, %v1807_v9  ;;  %v1810_v12 = vpop.f32.mrb[6].mxu0  ;;  %v1836_v15 = vpop.f32.mrb[5].mxu1 }
 0x101   :  { %v1811_v14 = vpop.f32.mrb[7].mxu0  ;;  %v1837_v17 = vadd.f32 %v1836_v15, %v1835_v13  ;;  %v1838_v18 = vpop.f32.mrb[6].mxu1 }
 0x102   :  { %v1249_v16 = vadd.f32 %v1809_v11, %v1613_v58  ;;  %v1839_v19 = vpop.f32.mrb[7].mxu1 }
 0x104   :  { %v1297_v20 = vadd.f32 %v1837_v17, %v1249_v16 }
 0x116   :  { %v1857_v21 = vpop.f32.mrb[8].mxu0 }
 0x117   :  { %v1885_v22 = vpop.f32.mrb[8].mxu1  ;;  %v1858_v23 = vpop.f32.mrb[9].mxu0 }
 0x118   :  { %v1859_v24 = vadd.f32 %v1858_v23, %v1857_v21  ;;  %v1886_v25 = vpop.f32.mrb[9].mxu1  ;;  %v1860_v26 = vpop.f32.mrb[10].mxu0 }
 0x119   :  { %v1887_v27 = vadd.f32 %v1886_v25, %v1885_v22  ;;  %v1888_v28 = vpop.f32.mrb[10].mxu1  ;;  %v1861_v29 = vpop.f32.mrb[11].mxu0 }
 0x11a   :  { %v1337_v30 = vadd.f32 %v1859_v24, %v1289_v6  ;;  %v1862_v31 = vadd.f32 %v1861_v29, %v1860_v26  ;;  %v1889_v32 = vpop.f32.mrb[11].mxu1 }
 0x11b   :  { %v1890_v33 = vadd.f32 %v1889_v32, %v1888_v28 }
 0x11c   :  { %v1385_v34 = vadd.f32 %v1887_v27, %v1337_v30  ;;  %v1340_v35 = vadd.f32 %v1862_v31, %v1292_v8 }
 0x11e   :  { %v1388_v36 = vadd.f32 %v1890_v33, %v1340_v35  ;;  %v1863_v37 = vpop.f32.mrb[12].mxu0 }
 0x11f   :  { %v1864_v38 = vpop.f32.mrb[13].mxu0  ;;  %v1891_v41 = vpop.f32.mrb[12].mxu1 }
 0x120   :  { %v1865_v39 = vadd.f32 %v1864_v38, %v1863_v37  ;;  %v1866_v40 = vpop.f32.mrb[14].mxu0  ;;  %v1892_v44 = vpop.f32.mrb[13].mxu1 }
 0x121   :  { %v1867_v42 = vpop.f32.mrb[15].mxu0  ;;  %v1893_v45 = vadd.f32 %v1892_v44, %v1891_v41  ;;  %v1894_v46 = vpop.f32.mrb[14].mxu1 }
 0x122   :  { %v1345_v43 = vadd.f32 %v1865_v39, %v1297_v20  ;;  %v1895_v47 = vpop.f32.mrb[15].mxu1 }
 0x124   :  { %v1393_v48 = vadd.f32 %v1893_v45, %v1345_v43 }
 0x136   :  { %v1913_v49 = vpop.f32.mrb[16].mxu0 }
 0x137   :  { %v1941_v50 = vpop.f32.mrb[16].mxu1  ;;  %v1914_v51 = vpop.f32.mrb[17].mxu0 }
 0x138   :  { %v1915_v52 = vadd.f32 %v1914_v51, %v1913_v49  ;;  %v1942_v53 = vpop.f32.mrb[17].mxu1  ;;  %v1916_v54 = vpop.f32.mrb[18].mxu0 }
 0x139   :  { %v1943_v55 = vadd.f32 %v1942_v53, %v1941_v50  ;;  %v1944_v56 = vpop.f32.mrb[18].mxu1  ;;  %v1917_v57 = vpop.f32.mrb[19].mxu0 }
 0x13a   :  { %v1433_v58 = vadd.f32 %v1915_v52, %v1385_v34  ;;  %v1918_v59 = vadd.f32 %v1917_v57, %v1916_v54  ;;  %v1945_v60 = vpop.f32.mrb[19].mxu1 }
 0x13b   :  { %v1946_v61 = vadd.f32 %v1945_v60, %v1944_v56 }
 0x13c   :  { %v1481_v62 = vadd.f32 %v1943_v55, %v1433_v58  ;;  %v1436_v63 = vadd.f32 %v1918_v59, %v1388_v36 }
 0x13e   :  { %v1484_v0 = vadd.f32 %v1946_v61, %v1436_v63  ;;  %v1919_v1 = vpop.f32.mrb[20].mxu0 }
 0x13f   :  { %v1920_v2 = vpop.f32.mrb[21].mxu0  ;;  %v1947_v5 = vpop.f32.mrb[20].mxu1 }
 0x140   :  { %v1921_v3 = vadd.f32 %v1920_v2, %v1919_v1  ;;  %v1922_v4 = vpop.f32.mrb[22].mxu0  ;;  %v1948_v8 = vpop.f32.mrb[21].mxu1 }
 0x141   :  { %v1923_v6 = vpop.f32.mrb[23].mxu0  ;;  %v1949_v9 = vadd.f32 %v1948_v8, %v1947_v5  ;;  %v1950_v10 = vpop.f32.mrb[22].mxu1 }
 0x142   :  { %v1441_v7 = vadd.f32 %v1921_v3, %v1393_v48  ;;  %v1951_v11 = vpop.f32.mrb[23].mxu1 }
 0x144   :  { %v1489_v12 = vadd.f32 %v1949_v9, %v1441_v7 }
 0x156   :  { %v1969_v13 = vpop.f32.mrb[24].mxu0 }
 0x157   :  { %v1997_v14 = vpop.f32.mrb[24].mxu1  ;;  %v1970_v15 = vpop.f32.mrb[25].mxu0 }
 0x158   :  { %v1971_v16 = vadd.f32 %v1970_v15, %v1969_v13  ;;  %v1998_v17 = vpop.f32.mrb[25].mxu1  ;;  %v1972_v18 = vpop.f32.mrb[26].mxu0 }
 0x159   :  { %v1999_v19 = vadd.f32 %v1998_v17, %v1997_v14  ;;  %v2000_v20 = vpop.f32.mrb[26].mxu1  ;;  %v1973_v21 = vpop.f32.mrb[27].mxu0 }
 0x15a   :  { %v1529_v22 = vadd.f32 %v1971_v16, %v1481_v62  ;;  %v1974_v23 = vadd.f32 %v1973_v21, %v1972_v18  ;;  %v2001_v24 = vpop.f32.mrb[27].mxu1 }
 0x15b   :  { %v2002_v25 = vadd.f32 %v2001_v24, %v2000_v20 }
 0x15c   :  { %v1577_v26 = vadd.f32 %v1999_v19, %v1529_v22  ;;  %v1532_v27 = vadd.f32 %v1974_v23, %v1484_v0 }
 0x15e   :  { %v1580_v28 = vadd.f32 %v2002_v25, %v1532_v27  ;;  %v1975_v29 = vpop.f32.mrb[28].mxu0  ;;  %v1590_v32 = vmax.f32 %v1577_v26, 0.0 }
 0x15f   :  { %v2003_v30 = vpop.f32.mrb[28].mxu1  ;;  %v1976_v31 = vpop.f32.mrb[29].mxu0 }
 0x160   :  { %v1591_v33 = vmax.f32 %v1580_v28, 0.0  ;;  %v1977_v34 = vadd.f32 %v1976_v31, %v1975_v29  ;;  %v2004_v35 = vpop.f32.mrb[29].mxu1  ;;  %v1978_v36 = vpop.f32.mrb[30].mxu0 }
 0x161   :  { %v2005_v37 = vadd.f32 %v2004_v35, %v2003_v30  ;;  %v2006_v38 = vpop.f32.mrb[30].mxu1  ;;  %v1979_v39 = vpop.f32.mrb[31].mxu0 }
 0x162   :  { %v1783_v40 = vpack.c.bf16 %v1591_v33, %v1590_v32  ;;  %v1537_v41 = vadd.f32 %v1977_v34, %v1489_v12  ;;  %v2007_v42 = vpop.f32.mrb[31].mxu1 }
 0x164   :  { %v1585_v43 = vadd.f32 %v2005_v37, %v1537_v41  ;;  %1784 = vst [vmem:[%s2641_s3] sm:$0xff] %v1783_v40  }
 0x166   :  { %v1592_v44 = vmax.f32 %v1585_v43, 0.0 }
 0x168   :  { %v1779_v45 = vpack.c.bf16 %v1592_v44, %v1592_v44 }
 0x16a   :  { %1608 = vst [vmem:[%s2641_s3 + $0x8] sm:$0x1] %v1779_v45 }

// kernel: dueling_dqn_forward.5
= control target key start
LH: loop header
LB: loop body
LE: loop exit
PB: predicated region body
PF: predicated region fallthrough
CT: control target
= control target key end

     0   :  { %v1997_v21 = vmov 1966171168   ;;  %v186_v23 = vlaneseq  ;;  %vm1999_vm0 = vmmov 0   ;;  %s2488_s1 = inlined_call_operand.vmem [shape: bf16[1152,128], index: 1, kind: input, shape index: {}]   ;;  %s2489_s0 = inlined_call_operand.vmem [shape: bf16[1,2,1152], index: 0, kind: input, shape index: {}]   ;;  %s2490_s3 = inlined_call_operand.vmem [shape: bf16[1,128,512], index: 3, kind: input, shape index: {}]   ;;  %s2491_s5 = inlined_call_operand.vmem [shape: bf16[512,128], index: 5, kind: input, shape index: {}]   ;;  %s2492_s2 = inlined_call_operand.vmem [shape: f32[1,128], index: 2, kind: input, shape index: {}]   ;;  %s2493_s4 = inlined_call_operand.vmem [shape: f32[1,512], index: 4, kind: input, shape index: {}]   ;;  %s2494_s6 = inlined_call_operand.vmem [shape: f32[1,128], index: 6, kind: input, shape index: {}]   ;;  %s2495_s7 = inlined_call_operand.vmem [shape: f32[2,128], index: 7, kind: output, shape index: {}]  }
   0x1   :  { %v1844_v0 = vld [vmem:[%s2488_s1 + $0x40] sm:$0xff]   ;;  %v1848_v4 = vld [vmem:[%s2488_s1 + $0x48] sm:$0xff]   ;;  %v1852_v8 = vld [vmem:[%s2488_s1 + $0x50] sm:$0xff]   ;;  %v184_v22 = vunpack.c.l.s4 %v1997_v21 }
   0x2   :  { %v1845_v1 = vld [vmem:[%s2488_s1] sm:$0xff]   ;;  %1679 = vmatprep.subr.bf16.mxu0 %v1844_v0  ;;  %v1849_v5 = vld [vmem:[%s2488_s1 + $0x8] sm:$0xff]   ;;  %v1853_v9 = vld [vmem:[%s2488_s1 + $0x10] sm:$0xff]   ;;  %v2116_v29 = vshrl.u32 %v186_v23, 7 }
   0x3   :  { %v1846_v2 = vld [vmem:[%s2488_s1 + $0xc0] sm:$0xff]   ;;  %1680 = vmatpush3.bf16.msra.mxu0 %v1845_v1  ;;  %v1850_v6 = vld [vmem:[%s2488_s1 + $0xc8] sm:$0xff]   ;;  %v1854_v10 = vld [vmem:[%s2488_s1 + $0xd0] sm:$0xff]   ;;  %v185_v28 = vunpack.c.0.s8 %v184_v22 }
   0x4   :  { %v1847_v3 = vld [vmem:[%s2488_s1 + $0x80] sm:$0xff]   ;;  %1701 = vmatprep.subr.bf16.mxu1 %v1846_v2  ;;  %1681 = vmatprep.subr.bf16.mxu0 %v1848_v4  ;;  %v1851_v7 = vld [vmem:[%s2488_s1 + $0x88] sm:$0xff]   ;;  %v1855_v11 = vld [vmem:[%s2488_s1 + $0x90] sm:$0xff]  }
   0x5   :  { %1702 = vmatpush3.bf16.msra.mxu1 %v1847_v3  ;;  %v1856_v12 = vld [vmem:[%s2488_s1 + $0x58] sm:$0xff]   ;;  %v1860_v16 = vld [vmem:[%s2488_s1 + $0x60] sm:$0xff]   ;;  %v1864_v20 = vld [vmem:[%s2488_s1 + $0x68] sm:$0xff]   ;;  %v2131_v34 = vsub.s32 %v185_v28, %v2116_v29 }
   0x6   :  { %1703 = vmatprep.subr.bf16.mxu1 %v1850_v6  ;;  %v1857_v13 = vld [vmem:[%s2488_s1 + $0x18] sm:$0xff]   ;;  %v1861_v17 = vld [vmem:[%s2488_s1 + $0x20] sm:$0xff]   ;;  %v1865_v24 = vld [vmem:[%s2488_s1 + $0x28] sm:$0xff]  }
   0x7   :  { %1682 = vmatpush3.bf16.msra.mxu0 %v1849_v5  ;;  %v1858_v14 = vld [vmem:[%s2488_s1 + $0xd8] sm:$0xff]   ;;  %v1862_v18 = vld [vmem:[%s2488_s1 + $0xe0] sm:$0xff]   ;;  %v1866_v25 = vld [vmem:[%s2488_s1 + $0xe8] sm:$0xff]  }
   0x8   :  { %1683 = vmatprep.subr.bf16.mxu0 %v1852_v8  ;;  %v1859_v15 = vld [vmem:[%s2488_s1 + $0x98] sm:$0xff]   ;;  %v1863_v19 = vld [vmem:[%s2488_s1 + $0xa0] sm:$0xff]   ;;  %v1867_v26 = vld [vmem:[%s2488_s1 + $0xa8] sm:$0xff]  }
   0x9   :  { %1704 = vmatpush3.bf16.msra.mxu1 %v1851_v7  ;;  %v1868_v27 = vld [vmem:[%s2488_s1 + $0x70] sm:$0xff]   ;;  %v1872_v33 = vld [vmem:[%s2488_s1 + $0x78] sm:$0xff]   ;;  %v27_v37 = vld [vmem:[%s2489_s0] sm:$0xff] }
   0xa   :  { %1705 = vmatprep.subr.bf16.mxu1 %v1854_v10  ;;  %v1869_v30 = vld [vmem:[%s2488_s1 + $0x30] sm:$0xff]   ;;  %v1873_v35 = vld [vmem:[%s2488_s1 + $0x38] sm:$0xff]   ;;  %v182_v38 = vcombine.high %v27_v37, %v27_v37  ;;  %v189_v39 = vrot.slane %v27_v37, %v2131_v34  ;;  %v1877_v41 = vld [vmem:[%s2488_s1 + $0x140] sm:$0xff]  }
   0xb   :  { %1684 = vmatpush3.bf16.msra.mxu0 %v1853_v9  ;;  %v1870_v31 = vld [vmem:[%s2488_s1 + $0xf0] sm:$0xff]   ;;  %v1874_v36 = vld [vmem:[%s2488_s1 + $0xf8] sm:$0xff]   ;;  %v1879_v45 = vld [vmem:[%s2488_s1 + $0x1c0] sm:$0xff]  }
   0xc   :  { %1685 = vmatprep.subr.bf16.mxu0 %v1856_v12  ;;  %v1871_v32 = vld [vmem:[%s2488_s1 + $0xb0] sm:$0xff]   ;;  %v1876_v40 = vld [vmem:[%s2488_s1 + $0xb8] sm:$0xff]   ;;  %v197_v42 = vcombine.high %v189_v39, %v189_v39  ;;  %v205_v43 = vrot.slane %v189_v39, %v2131_v34  ;;  %v2151_v44 = vrot.slane %v182_v38, %v2131_v34  ;;  %v1878_v47 = vld [vmem:[%s2488_s1 + $0x100] sm:$0xff]  }
   0xd   :  { %1706 = vmatpush3.bf16.msra.mxu1 %v1855_v11  ;;  %v1881_v50 = vld [vmem:[%s2488_s1 + $0x148] sm:$0xff]   ;;  %v1880_v52 = vld [vmem:[%s2488_s1 + $0x180] sm:$0xff]   ;;  %v1885_v57 = vld [vmem:[%s2488_s1 + $0x150] sm:$0xff]  }
   0xe   :  { %1707 = vmatprep.subr.bf16.mxu1 %v1858_v14  ;;  %v219_v46 = vrot.slane %v197_v42, %v2131_v34  ;;  %v198_v48 = vcombine.high %v2151_v44, %v2151_v44  ;;  %v227_v49 = vcombine.high %v205_v43, %v205_v43  ;;  %v1883_v54 = vld [vmem:[%s2488_s1 + $0x1c8] sm:$0xff]   ;;  %v1887_v59 = vld [vmem:[%s2488_s1 + $0x1d0] sm:$0xff]   ;;  %v1889_v61 = vld [vmem:[%s2488_s1 + $0x158] sm:$0xff]  }
   0xf   :  { %1686 = vmatpush3.bf16.msra.mxu0 %v1857_v13  ;;  %v1882_v55 = vld [vmem:[%s2488_s1 + $0x108] sm:$0xff]   ;;  %v1886_v60 = vld [vmem:[%s2488_s1 + $0x110] sm:$0xff]   ;;  %v1891_v63 = vld [vmem:[%s2488_s1 + $0x1d8] sm:$0xff]  }
  0x10   :  { %1687 = vmatprep.subr.bf16.mxu0 %v1860_v16  ;;  %718 = vmatprep.mubr.bf16.mxu0 %v219_v46  ;;  %v229_v51 = vcombine.high %v219_v46, %v219_v46  ;;  %v226_v53 = vrot.slane %v198_v48, %v2131_v34  ;;  %v1884_v58 = vld [vmem:[%s2488_s1 + $0x188] sm:$0xff]   ;;  %v1888_v62 = vld [vmem:[%s2488_s1 + $0x190] sm:$0xff]   ;;  %v1890_v0 = vld [vmem:[%s2488_s1 + $0x118] sm:$0xff]  }
  0x11   :  { %1708 = vmatpush3.bf16.msra.mxu1 %v1859_v15  ;;  %v1893_v1 = vld [vmem:[%s2488_s1 + $0x160] sm:$0xff]   ;;  %v1892_v2 = vld [vmem:[%s2488_s1 + $0x198] sm:$0xff]   ;;  %v1897_v5 = vld [vmem:[%s2488_s1 + $0x168] sm:$0xff]  }
  0x12   :  { %1709 = vmatprep.subr.bf16.mxu1 %v1862_v18  ;;  %758 = vmatprep.mubr.bf16.mxu1 %v229_v51  ;;  %v230_v56 = vcombine.high %v226_v53, %v226_v53  ;;  %v1895_v3 = vld [vmem:[%s2488_s1 + $0x1e0] sm:$0xff]   ;;  %v1899_v7 = vld [vmem:[%s2488_s1 + $0x1e8] sm:$0xff]   ;;  %v1901_v9 = vld [vmem:[%s2488_s1 + $0x170] sm:$0xff]  }
  0x13   :  { %1688 = vmatpush3.bf16.msra.mxu0 %v1861_v17  ;;  %v1894_v4 = vld [vmem:[%s2488_s1 + $0x120] sm:$0xff]   ;;  %v1898_v8 = vld [vmem:[%s2488_s1 + $0x128] sm:$0xff]   ;;  %v1903_v11 = vld [vmem:[%s2488_s1 + $0x1f0] sm:$0xff]   ;;  %v212_v17 = vrot.slane %v2151_v44, %v2131_v34 }
  0x14   :  { %1689 = vmatprep.subr.bf16.mxu0 %v1864_v20  ;;  %v1896_v6 = vld [vmem:[%s2488_s1 + $0x1a0] sm:$0xff]   ;;  %v1900_v10 = vld [vmem:[%s2488_s1 + $0x1a8] sm:$0xff]   ;;  %v1902_v12 = vld [vmem:[%s2488_s1 + $0x130] sm:$0xff]   ;;  %v1998_v20 = vmov 0.0  }
  0x15   :  { %1710 = vmatpush3.bf16.msra.mxu1 %v1863_v19  ;;  %v1905_v13 = vld [vmem:[%s2488_s1 + $0x178] sm:$0xff]   ;;  %v1904_v14 = vld [vmem:[%s2488_s1 + $0x1b0] sm:$0xff]   ;;  %v1909_v19 = vld [vmem:[%s2488_s1 + $0x200] sm:$0xff]   ;;  %v228_v21 = vcombine.high %v212_v17, %v212_v17 }
  0x16   :  { %1711 = vmatprep.subr.bf16.mxu1 %v1866_v25  ;;  %v1907_v15 = vld [vmem:[%s2488_s1 + $0x1f8] sm:$0xff]   ;;  %v1910_v22 = vld [vmem:[%s2488_s1 + $0x208] sm:$0xff]   ;;  %v1911_v25 = vld [vmem:[%s2488_s1 + $0x210] sm:$0xff]  }
  0x17   :  { %1690 = vmatpush3.bf16.msra.mxu0 %v1865_v24  ;;  %v1906_v16 = vld [vmem:[%s2488_s1 + $0x138] sm:$0xff]   ;;  %v1541_v23 = vld.sshfl [vmem:[%s2489_s0 + $0x8] sm:$0x1 pattern:$0x75316420] }
  0x18   :  { %1691 = vmatprep.subr.bf16.mxu0 %v1868_v27  ;;  %v1908_v18 = vld [vmem:[%s2488_s1 + $0x1b8] sm:$0xff]   ;;  %v244_v24 = vrot.slane %v1541_v23, %v2131_v34  ;;  %v1913_v27 = vld [vmem:[%s2488_s1 + $0x220] sm:$0xff]   ;;  %v1914_v28 = vld [vmem:[%s2488_s1 + $0x228] sm:$0xff]  }
  0x19   :  { %1712 = vmatpush3.bf16.msra.mxu1 %v1867_v26  ;;  %v1912_v26 = vld [vmem:[%s2488_s1 + $0x218] sm:$0xff]   ;;  %v1925_v37 = vld [vmem:[%s2490_s3 + $0x24] ss:$16 sps:$4 sm:$0xff]   ;;  %v1935_v46 = vld [vmem:[%s2490_s3 + $0x60] ss:$16 sps:$4 sm:$0xff]  }
  0x1a   :  { %1713 = vmatprep.subr.bf16.mxu1 %v1870_v31  ;;  %v1916_v31 = vld [vmem:[%s2488_s1 + $0x238] sm:$0xff]   ;;  %v1937_v44 = vld [vmem:[%s2490_s3 + $0x64] ss:$16 sps:$4 sm:$0xff]  }
  0x1b   :  { %1692 = vmatpush3.bf16.msra.mxu0 %v1869_v30  ;;  %v1915_v30 = vld [vmem:[%s2488_s1 + $0x230] sm:$0xff]   ;;  %v1920_v34 = vld [vmem:[%s2490_s3 + $0x8] ss:$16 sps:$4 sm:$0xff]   ;;  %v1928_v39 = vld [vmem:[%s2490_s3 + $0x2c] ss:$16 sps:$4 sm:$0xff]  }
  0x1c   :  { %1693 = vmatprep.subr.bf16.mxu0 %v1872_v33  ;;  %v1919_v33 = vld [vmem:[%s2490_s3 + $0x4] ss:$16 sps:$4 sm:$0xff]   ;;  %v1926_v38 = vld [vmem:[%s2490_s3 + $0x28] ss:$16 sps:$4 sm:$0xff]   ;;  %v1934_v42 = vld [vmem:[%s2490_s3 + $0x4c] ss:$16 sps:$4 sm:$0xff]  }
  0x1d   :  { %1714 = vmatpush3.bf16.msra.mxu1 %v1871_v32  ;;  %v1917_v32 = vld [vmem:[%s2490_s3] ss:$16 sps:$4 sm:$0xff]   ;;  %v1943_v48 = vld [vmem:[%s2490_s3 + $0x84] ss:$16 sps:$4 sm:$0xff]   ;;  %v1944_v51 = vld [vmem:[%s2490_s3 + $0x88] ss:$16 sps:$4 sm:$0xff]  }
  0x1e   :  { %1715 = vmatprep.subr.bf16.mxu1 %v1874_v36  ;;  %v1923_v36 = vld [vmem:[%s2490_s3 + $0x20] ss:$16 sps:$4 sm:$0xff]  }
  0x1f   :  { %1694 = vmatpush3.bf16.msra.mxu0 %v1873_v35  ;;  %v1922_v35 = vld [vmem:[%s2490_s3 + $0xc] ss:$16 sps:$4 sm:$0xff]  }
  0x20   :  { %1723 = vmatprep.subr.bf16.mxu0 %v1877_v41  ;;  %v1929_v41 = vld [vmem:[%s2490_s3 + $0x40] ss:$16 sps:$4 sm:$0xff]  }
  0x21   :  { %1716 = vmatpush3.bf16.msra.mxu1 %v1876_v40  ;;  %v1931_v40 = vld [vmem:[%s2490_s3 + $0x44] ss:$16 sps:$4 sm:$0xff]  }
  0x22   :  { %1745 = vmatprep.subr.bf16.mxu1 %v1879_v45  ;;  %719 = vmatmul.mubr.bf16.vlgmr.msra.gmra.mrb[0].mxu0 %v205_v43  ;;  %v1932_v43 = vld [vmem:[%s2490_s3 + $0x48] ss:$16 sps:$4 sm:$0xff]   ;;  %v1940_v45 = vld [vmem:[%s2490_s3 + $0x6c] ss:$16 sps:$4 sm:$0xff]  }
  0x23   :  { %1724 = vmatpush3.bf16.msra.mxu0 %v1878_v47  ;;  %798 = vmatprep.mubr.bf16.mxu0 %v226_v53  ;;  %v1938_v47 = vld [vmem:[%s2490_s3 + $0x68] ss:$16 sps:$4 sm:$0xff]   ;;  %v1952_v53 = vld [vmem:[%s2490_s3 + $0xac] ss:$16 sps:$4 sm:$0xff]  }
  0x24   :  { %759 = vmatmul.mubr.bf16.vlgmr.msra.gmra.mrb[0].mxu1 %v227_v49  ;;  %1725 = vmatprep.subr.bf16.mxu0 %v1881_v50  ;;  %v1946_v49 = vld [vmem:[%s2490_s3 + $0x8c] ss:$16 sps:$4 sm:$0xff]   ;;  %v1941_v50 = vld [vmem:[%s2490_s3 + $0x80] ss:$16 sps:$4 sm:$0xff]  }
  0x25   :  { %1746 = vmatpush3.bf16.msra.mxu1 %v1880_v52  ;;  %838 = vmatprep.mubr.bf16.mxu1 %v230_v56  ;;  %v1949_v52 = vld [vmem:[%s2490_s3 + $0xa4] ss:$16 sps:$4 sm:$0xff]  }
  0x26   :  { %1747 = vmatprep.subr.bf16.mxu1 %v1883_v54  ;;  %v1947_v54 = vld [vmem:[%s2490_s3 + $0xa0] ss:$16 sps:$4 sm:$0xff]   ;;  %v1955_v56 = vld [vmem:[%s2490_s3 + $0xc4] ss:$16 sps:$4 sm:$0xff]  }
  0x27   :  { %1726 = vmatpush3.bf16.msra.mxu0 %v1882_v55  ;;  %v1950_v55 = vld [vmem:[%s2490_s3 + $0xa8] ss:$16 sps:$4 sm:$0xff]  }
  0x28   :  { %1727 = vmatprep.subr.bf16.mxu0 %v1885_v57  ;;  %v1958_v57 = vld [vmem:[%s2490_s3 + $0xcc] ss:$16 sps:$4 sm:$0xff]  }
  0x29   :  { %1748 = vmatpush3.bf16.msra.mxu1 %v1884_v58  ;;  %v1953_v58 = vld [vmem:[%s2490_s3 + $0xc0] ss:$16 sps:$4 sm:$0xff]  }
  0x2a   :  { %1749 = vmatprep.subr.bf16.mxu1 %v1887_v59  ;;  %v1956_v59 = vld [vmem:[%s2490_s3 + $0xc8] ss:$16 sps:$4 sm:$0xff]  }
  0x2b   :  { %1728 = vmatpush3.bf16.msra.mxu0 %v1886_v60  ;;  %v1961_v60 = vld [vmem:[%s2490_s3 + $0xe4] ss:$16 sps:$4 sm:$0xff]  }
  0x2c   :  { %1729 = vmatprep.subr.bf16.mxu0 %v1889_v61  ;;  %v1964_v61 = vld [vmem:[%s2490_s3 + $0xec] ss:$16 sps:$4 sm:$0xff]  }
  0x2d   :  { %1750 = vmatpush3.bf16.msra.mxu1 %v1888_v62  ;;  %v1959_v62 = vld [vmem:[%s2490_s3 + $0xe0] ss:$16 sps:$4 sm:$0xff]  }
  0x2e   :  { %1751 = vmatprep.subr.bf16.mxu1 %v1891_v63  ;;  %v1962_v63 = vld [vmem:[%s2490_s3 + $0xe8] ss:$16 sps:$4 sm:$0xff]  }
  0x2f   :  { %1730 = vmatpush3.bf16.msra.mxu0 %v1890_v0  ;;  %v2000_v0 = vmov 0  }
  0x30   :  { %1731 = vmatprep.subr.bf16.mxu0 %v1893_v1  ;;  %v1965_v1 = vld [vmem:[%s2491_s5 + $0x40] sm:$0xff]  }
  0x31   :  { %1752 = vmatpush3.bf16.msra.mxu1 %v1892_v2  ;;  %v1966_v2 = vld [vmem:[%s2491_s5 + $0xc0] sm:$0xff]  }
  0x32   :  { %1753 = vmatprep.subr.bf16.mxu1 %v1895_v3 }
  0x33   :  { %1732 = vmatpush3.bf16.msra.mxu0 %v1894_v4  ;;  %v1540_v4 = vld [vmem:[%s2492_s2] ss:$0 sm:$0xff] }
  0x34   :  { %1733 = vmatprep.subr.bf16.mxu0 %v1897_v5 }
  0x35   :  { %1754 = vmatpush3.bf16.msra.mxu1 %v1896_v6 }
  0x36   :  { %1755 = vmatprep.subr.bf16.mxu1 %v1899_v7 }
  0x37   :  { %1734 = vmatpush3.bf16.msra.mxu0 %v1898_v8 }
  0x38   :  { %1735 = vmatprep.subr.bf16.mxu0 %v1901_v9 }
  0x39   :  { %1756 = vmatpush3.bf16.msra.mxu1 %v1900_v10 }
  0x3a   :  { %1757 = vmatprep.subr.bf16.mxu1 %v1903_v11 }
  0x3b   :  { %1736 = vmatpush3.bf16.msra.mxu0 %v1902_v12 }
  0x3c   :  { %1737 = vmatprep.subr.bf16.mxu0 %v1905_v13 }
  0x3d   :  { %1758 = vmatpush3.bf16.msra.mxu1 %v1904_v14 }
  0x3e   :  { %1759 = vmatprep.subr.bf16.mxu1 %v1907_v15 }
  0x3f   :  { %1738 = vmatpush3.bf16.msra.mxu0 %v1906_v16 }
  0x40   :  { %1820 = vmatprep.subr.bf16.mxu0 %v1998_v20 }
  0x41   :  { %1760 = vmatpush3.bf16.msra.mxu1 %v1908_v18 }
  0x42   :  { %799 = vmatmul.mubr.bf16.vlgmr.msra.gmra.mrb[4].mxu0 %v212_v17  ;;  %1102 = vmatprep.subr.bf16.mxu1 %v1919_v33 }
  0x43   :  { %1821 = vmatpush3.bf16.msra.mxu0 %v1909_v19  ;;  %1836 = vmatprep.mubr.msk.bf16.mxu0 %vm1999_vm0, %v1998_v20 }
  0x44   :  { %839 = vmatmul.mubr.bf16.vlgmr.msra.gmra.mrb[4].mxu1 %v228_v21  ;;  %1822 = vmatprep.subr.bf16.mxu0 %v1998_v20 }
  0x45   :  { %1103 = vmatpush1.bf16.msra.mxu1 %v1917_v32  ;;  %1134 = vmatprep.mubr.bf16.mxu1 %v2000_v0 }
  0x46   :  { %1104 = vmatprep.subr.bf16.mxu1 %v1925_v37 }
  0x47   :  { %1823 = vmatpush3.bf16.msra.mxu0 %v1910_v22 }
  0x48   :  { %1824 = vmatprep.subr.bf16.mxu0 %v1998_v20 }
  0x49   :  { %1105 = vmatpush1.bf16.msra.mxu1 %v1923_v36  ;;  %v1968_v36 = vld [vmem:[%s2491_s5 + $0x80] sm:$0xff]  }
  0x4a   :  { %1106 = vmatprep.subr.bf16.mxu1 %v1931_v40  ;;  %v1971_v40 = vld [vmem:[%s2491_s5 + $0x8] sm:$0xff]  }
  0x4b   :  { %1825 = vmatpush3.bf16.msra.mxu0 %v1911_v25 }
  0x4c   :  { %1826 = vmatprep.subr.bf16.mxu0 %v1998_v20 }
  0x4d   :  { %1107 = vmatpush1.bf16.msra.mxu1 %v1929_v41  ;;  %v1972_v41 = vld [vmem:[%s2491_s5 + $0x88] sm:$0xff]  }
  0x4e   :  { %1108 = vmatprep.subr.bf16.mxu1 %v1937_v44  ;;  %v1975_v44 = vld [vmem:[%s2491_s5 + $0x10] sm:$0xff]  }
  0x4f   :  { %1827 = vmatpush3.bf16.msra.mxu0 %v1912_v26 }
  0x50   :  { %1828 = vmatprep.subr.bf16.mxu0 %v1998_v20 }
  0x51   :  { %1109 = vmatpush1.bf16.msra.mxu1 %v1935_v46  ;;  %v1977_v46 = vld [vmem:[%s2491_s5 + $0x58] sm:$0xff]  }
  0x52   :  { %1110 = vmatprep.subr.bf16.mxu1 %v1943_v48  ;;  %v1979_v48 = vld [vmem:[%s2491_s5 + $0x18] sm:$0xff]  }
  0x53   :  { %1829 = vmatpush3.bf16.msra.mxu0 %v1913_v27 }
  0x54   :  { %1830 = vmatprep.subr.bf16.mxu0 %v1998_v20 }
  0x55   :  { %1111 = vmatpush1.bf16.msra.mxu1 %v1941_v50  ;;  %v1981_v50 = vld [vmem:[%s2491_s5 + $0x60] sm:$0xff]  }
  0x56   :  { %1112 = vmatprep.subr.bf16.mxu1 %v1949_v52  ;;  %v1983_v52 = vld [vmem:[%s2491_s5 + $0x20] sm:$0xff]  }
  0x57   :  { %1831 = vmatpush3.bf16.msra.mxu0 %v1914_v28 }
  0x58   :  { %1832 = vmatprep.subr.bf16.mxu0 %v1998_v20 }
  0x59   :  { %1113 = vmatpush1.bf16.msra.mxu1 %v1947_v54  ;;  %v1985_v54 = vld [vmem:[%s2491_s5 + $0x68] sm:$0xff]  }
  0x5a   :  { %1114 = vmatprep.subr.bf16.mxu1 %v1955_v56  ;;  %v1987_v56 = vld [vmem:[%s2491_s5 + $0x28] sm:$0xff]  }
  0x5b   :  { %1833 = vmatpush3.bf16.msra.mxu0 %v1915_v30 }
  0x5c   :  { %1834 = vmatprep.subr.bf16.mxu0 %v1998_v20 }
  0x5d   :  { %1115 = vmatpush1.bf16.msra.mxu1 %v1953_v58  ;;  %v1989_v58 = vld [vmem:[%s2491_s5 + $0x70] sm:$0xff]  }
  0x5e   :  { %1116 = vmatprep.subr.bf16.mxu1 %v1961_v60  ;;  %v1991_v60 = vld [vmem:[%s2491_s5 + $0x30] sm:$0xff]  }
  0x5f   :  { %1835 = vmatpush3.bf16.msra.mxu0 %v1916_v31 }
  0x60   :  { %1143 = vmatprep.subr.bf16.mxu0 %v1922_v35  ;;  %v1967_v35 = vld [vmem:[%s2491_s5] sm:$0xff]  }
  0x61   :  { %1117 = vmatpush1.bf16.msra.mxu1 %v1959_v62  ;;  %v1993_v62 = vld [vmem:[%s2491_s5 + $0x78] sm:$0xff]  }
  0x62   :  { %1837 = vmatmul.mubr.bf16.vlgmr.msra.gmra.mrb[8].mxu0 %v244_v24  ;;  %1776 = vmatprep.subr.bf16.mxu1 %v1965_v1  ;;  %v1996_v1 = vld [vmem:[%s2491_s5 + $0xb8] sm:$0xff]  }
  0x63   :  { %1144 = vmatpush1.bf16.msra.mxu0 %v1920_v34  ;;  %1175 = vmatprep.mubr.bf16.mxu0 %v2000_v0  ;;  %v1995_v0 = vld [vmem:[%s2491_s5 + $0x38] sm:$0xff]  }
  0x64   :  { %1145 = vmatprep.subr.bf16.mxu0 %v1928_v39  ;;  %v1970_v39 = vld [vmem:[%s2491_s5 + $0xc8] sm:$0xff]  }
  0x67   :  { %1146 = vmatpush1.bf16.msra.mxu0 %v1926_v38  ;;  %v1969_v38 = vld [vmem:[%s2491_s5 + $0x48] sm:$0xff]  }
  0x68   :  { %1147 = vmatprep.subr.bf16.mxu0 %v1934_v42  ;;  %v1973_v42 = vld [vmem:[%s2491_s5 + $0x50] sm:$0xff]  }
  0x6b   :  { %1148 = vmatpush1.bf16.msra.mxu0 %v1932_v43  ;;  %v1974_v43 = vld [vmem:[%s2491_s5 + $0xd0] sm:$0xff]  }
  0x6c   :  { %1149 = vmatprep.subr.bf16.mxu0 %v1940_v45  ;;  %v1976_v45 = vld [vmem:[%s2491_s5 + $0x90] sm:$0xff]  }
  0x6f   :  { %1150 = vmatpush1.bf16.msra.mxu0 %v1938_v47  ;;  %v1978_v47 = vld [vmem:[%s2491_s5 + $0xd8] sm:$0xff]  }
  0x70   :  { %1151 = vmatprep.subr.bf16.mxu0 %v1946_v49  ;;  %v1980_v49 = vld [vmem:[%s2491_s5 + $0x98] sm:$0xff]  }
  0x73   :  { %1152 = vmatpush1.bf16.msra.mxu0 %v1944_v51  ;;  %v1982_v51 = vld [vmem:[%s2491_s5 + $0xe0] sm:$0xff]  }
  0x74   :  { %1153 = vmatprep.subr.bf16.mxu0 %v1952_v53  ;;  %v1984_v53 = vld [vmem:[%s2491_s5 + $0xa0] sm:$0xff]  }
  0x77   :  { %1154 = vmatpush1.bf16.msra.mxu0 %v1950_v55  ;;  %v1986_v55 = vld [vmem:[%s2491_s5 + $0xe8] sm:$0xff]  }
  0x78   :  { %1155 = vmatprep.subr.bf16.mxu0 %v1958_v57  ;;  %v1988_v57 = vld [vmem:[%s2491_s5 + $0xa8] sm:$0xff]  }
  0x7b   :  { %1156 = vmatpush1.bf16.msra.mxu0 %v1956_v59  ;;  %v1990_v59 = vld [vmem:[%s2491_s5 + $0xf0] sm:$0xff]  }
  0x7c   :  { %1157 = vmatprep.subr.bf16.mxu0 %v1964_v61  ;;  %v1992_v61 = vld [vmem:[%s2491_s5 + $0xb0] sm:$0xff]  }
  0x7f   :  { %1158 = vmatpush1.bf16.msra.mxu0 %v1962_v63  ;;  %v1994_v63 = vld [vmem:[%s2491_s5 + $0xf8] sm:$0xff]  }
  0x80   :  { %1798 = vmatprep.subr.bf16.mxu0 %v1966_v2  ;;  %v924_v2 = vsub.s32 0, %v2116_v29 }
  0xf5   :  { %v1695_v3 = vpop.f32.mrb[0].mxu0 }
  0xf6   :  { %v1696_v5 = vpop.f32.mrb[1].mxu0 }
  0xf7   :  { %v1697_v6 = vadd.f32 %v1696_v5, %v1695_v3  ;;  %v1698_v7 = vpop.f32.mrb[2].mxu0  ;;  %v1717_v8 = vpop.f32.mrb[0].mxu1  ;;  %v932_v3 = vsub.s32 2, %v2116_v29  ;;  %v928_v5 = vsub.s32 1, %v2116_v29 }
  0xf8   :  { %v1699_v9 = vpop.f32.mrb[3].mxu0  ;;  %v1718_v10 = vpop.f32.mrb[1].mxu1 }
  0xf9   :  { %v721_v11 = vadd.f32 %v1697_v6, %v1540_v4  ;;  %v1719_v12 = vadd.f32 %v1718_v10, %v1717_v8  ;;  %v1720_v13 = vpop.f32.mrb[2].mxu1  ;;  %v920_v4 = vld [vmem:[%s2493_s4] sm:$0xf]  ;;  %v936_v6 = vsub.s32 3, %v2116_v29 }
  0xfa   :  { %v1721_v14 = vpop.f32.mrb[3].mxu1  ;;  %v925_v7 = vrot.slane %v920_v4, %v924_v2  ;;  %v933_v8 = vrot.slane %v920_v4, %v932_v3  ;;  %v929_v9 = vrot.slane %v920_v4, %v928_v5 }
  0xfb   :  { %v761_v15 = vadd.f32 %v1719_v12, %v721_v11  ;;  %v937_v10 = vrot.slane %v920_v4, %v936_v6 }
 0x115   :  { %v1739_v16 = vpop.f32.mrb[4].mxu0 }
 0x116   :  { %v1740_v17 = vpop.f32.mrb[5].mxu0 }
 0x117   :  { %v1741_v18 = vadd.f32 %v1740_v17, %v1739_v16  ;;  %v1742_v19 = vpop.f32.mrb[6].mxu0  ;;  %v1761_v20 = vpop.f32.mrb[4].mxu1 }
 0x118   :  { %v1743_v21 = vpop.f32.mrb[7].mxu0  ;;  %v1762_v22 = vpop.f32.mrb[5].mxu1 }
 0x119   :  { %v801_v23 = vadd.f32 %v1741_v18, %v761_v15  ;;  %v1763_v24 = vadd.f32 %v1762_v22, %v1761_v20  ;;  %v1764_v25 = vpop.f32.mrb[6].mxu1 }
 0x11a   :  { %v1765_v26 = vpop.f32.mrb[7].mxu1 }
 0x11b   :  { %v841_v27 = vadd.f32 %v1763_v24, %v801_v23 }
 0x135   :  { %v880_v28 = vpop.f32.mrb[8].mxu0 }
 0x136   :  { %v881_v30 = vadd.f32 %v880_v28, %v841_v27  ;;  %v1838_v31 = vpop.f32.mrb[9].mxu0 }
 0x137   :  { %v883_v32 = vpop.f32.mrb[10].mxu0 }
 0x138   :  { %v886_v33 = vmax.f32 %v881_v30, 0.0  ;;  %v1839_v34 = vpop.f32.mrb[11].mxu0 }
 0x13a   :  { %v887_v37 = vpack.c.bf16 %v886_v33, %v886_v33  ;;  %v1646_v33 = vld [vmem:[%s2494_s6] ss:$0 sm:$0xff] }
 0x13c   :  { %1135 = vmatmul.mubr.bf16.vlgmr.msra.gmra.mrb[8].mxu1 %v887_v37  ;;  %1176 = vmatmul.mubr.bf16.vlgmr.msra.gmra.mrb[12].mxu0 %v887_v37 }
 0x13d   :  { %1777 = vmatpush3.bf16.msra.mxu1 %v1967_v35  ;;  %1799 = vmatpush3.bf16.msra.mxu0 %v1968_v36 }
 0x13e   :  { %1778 = vmatprep.subr.bf16.mxu1 %v1969_v38  ;;  %1800 = vmatprep.subr.bf16.mxu0 %v1970_v39 }
 0x141   :  { %1779 = vmatpush3.bf16.msra.mxu1 %v1971_v40  ;;  %1801 = vmatpush3.bf16.msra.mxu0 %v1972_v41 }
 0x142   :  { %1780 = vmatprep.subr.bf16.mxu1 %v1973_v42  ;;  %1802 = vmatprep.subr.bf16.mxu0 %v1974_v43 }
 0x145   :  { %1781 = vmatpush3.bf16.msra.mxu1 %v1975_v44  ;;  %1803 = vmatpush3.bf16.msra.mxu0 %v1976_v45 }
 0x146   :  { %1782 = vmatprep.subr.bf16.mxu1 %v1977_v46  ;;  %1804 = vmatprep.subr.bf16.mxu0 %v1978_v47 }
 0x149   :  { %1783 = vmatpush3.bf16.msra.mxu1 %v1979_v48  ;;  %1805 = vmatpush3.bf16.msra.mxu0 %v1980_v49 }
 0x14a   :  { %1784 = vmatprep.subr.bf16.mxu1 %v1981_v50  ;;  %1806 = vmatprep.subr.bf16.mxu0 %v1982_v51 }
 0x14d   :  { %1785 = vmatpush3.bf16.msra.mxu1 %v1983_v52  ;;  %1807 = vmatpush3.bf16.msra.mxu0 %v1984_v53 }
 0x14e   :  { %1786 = vmatprep.subr.bf16.mxu1 %v1985_v54  ;;  %1808 = vmatprep.subr.bf16.mxu0 %v1986_v55 }
 0x151   :  { %1787 = vmatpush3.bf16.msra.mxu1 %v1987_v56  ;;  %1809 = vmatpush3.bf16.msra.mxu0 %v1988_v57 }
 0x152   :  { %1788 = vmatprep.subr.bf16.mxu1 %v1989_v58  ;;  %1810 = vmatprep.subr.bf16.mxu0 %v1990_v59 }
 0x155   :  { %1789 = vmatpush3.bf16.msra.mxu1 %v1991_v60  ;;  %1811 = vmatpush3.bf16.msra.mxu0 %v1992_v61 }
 0x156   :  { %1790 = vmatprep.subr.bf16.mxu1 %v1993_v62  ;;  %1812 = vmatprep.subr.bf16.mxu0 %v1994_v63 }
 0x159   :  { %1791 = vmatpush3.bf16.msra.mxu1 %v1995_v0  ;;  %1813 = vmatpush3.bf16.msra.mxu0 %v1996_v1 }
 0x20f   :  { %v1136_v11 = vpop.f32.mrb[8].mxu1  ;;  %v1177_v12 = vpop.f32.mrb[12].mxu0 }
 0x210   :  { %v1137_v13 = vadd.f32 %v1136_v11, %v925_v7  ;;  %v1178_v14 = vadd.f32 %v1177_v12, %v933_v8  ;;  %v1138_v15 = vpop.f32.mrb[9].mxu1  ;;  %v1179_v16 = vpop.f32.mrb[13].mxu0 }
 0x211   :  { %v1139_v17 = vadd.f32 %v1138_v15, %v929_v9  ;;  %v1180_v18 = vadd.f32 %v1179_v16, %v937_v10  ;;  %v1140_v19 = vpop.f32.mrb[10].mxu1  ;;  %v1181_v20 = vpop.f32.mrb[14].mxu0 }
 0x212   :  { %v1184_v21 = vmax.f32 %v1137_v13, 0.0  ;;  %v1186_v22 = vmax.f32 %v1178_v14, 0.0  ;;  %v1141_v23 = vpop.f32.mrb[11].mxu1  ;;  %v1182_v24 = vpop.f32.mrb[15].mxu0 }
 0x213   :  { %v1185_v25 = vmax.f32 %v1139_v17, 0.0  ;;  %v1187_v29 = vmax.f32 %v1180_v18, 0.0 }
 0x214   :  { %v1188_v28 = vpack.c.bf16 %v1184_v21, %v1184_v21  ;;  %v1190_v30 = vpack.c.bf16 %v1186_v22, %v1186_v22 }
 0x215   :  { %v1189_v26 = vpack.c.bf16 %v1185_v25, %v1185_v25  ;;  %v1191_v27 = vpack.c.bf16 %v1187_v29, %v1187_v29 }
 0x217   :  { %1487 = vmatprep.mubr.bf16.mxu1 %v1189_v26  ;;  %1527 = vmatprep.mubr.bf16.mxu0 %v1191_v27 }
 0x218   :  { %1488 = vmatmul.mubr.bf16.vlgmr.msra.gmra.mrb[12].mxu1 %v1188_v28  ;;  %1528 = vmatmul.mubr.bf16.vlgmr.msra.gmra.mrb[16].mxu0 %v1190_v30 }
 0x2eb   :  { %v1792_v31 = vpop.f32.mrb[12].mxu1  ;;  %v1814_v32 = vpop.f32.mrb[16].mxu0 }
 0x2ec   :  { %v1793_v34 = vpop.f32.mrb[13].mxu1  ;;  %v1815_v35 = vpop.f32.mrb[17].mxu0 }
 0x2ed   :  { %v1794_v36 = vadd.f32 %v1793_v34, %v1792_v31  ;;  %v1816_v37 = vadd.f32 %v1815_v35, %v1814_v32  ;;  %v1795_v38 = vpop.f32.mrb[14].mxu1  ;;  %v1817_v39 = vpop.f32.mrb[18].mxu0 }
 0x2ee   :  { %v1796_v40 = vpop.f32.mrb[15].mxu1  ;;  %v1818_v41 = vpop.f32.mrb[19].mxu0 }
 0x2ef   :  { %v1490_v42 = vadd.f32 %v1794_v36, %v1646_v33 }
 0x2f1   :  { %v1530_v43 = vadd.f32 %v1816_v37, %v1490_v42 }
 0x2f3   :  { %1535 = vst [vmem:[%s2495_s7] sm:$0x3] %v1530_v43 }

</bundles_post_ra>
